<compile_context>
chip_gen: v7x
topology: tpu7x:2x2x1
jax: 0.10.0
libtpu: 0.0.40
codegen_flags: <defaults>
</compile_context>

<pallas_src>
import functools

import jax
import jax.numpy as jnp
from jax import lax
from jax.experimental import pallas as pl
from jax.experimental.pallas import tpu as pltpu

HIDDEN = 128  # hidden_dim in the PyTorch module


def _round_up(n, m):
    return ((n + m - 1) // m) * m


def _bi_lstm_fc_kernel(x_f_ref,    # (Tc, Bp, W) f32 : x chunk, forward time order
                       x_b_ref,    # (Tc, Bp, W) f32 : x chunk of the time-reversed sequence
                       wih_f_ref,  # (W, 4H)  bf16
                       wih_b_ref,  # (W, 4H)  bf16
                       b_f_ref,    # (1, 4H)  f32  (b_ih + b_hh, forward)
                       b_b_ref,    # (1, 4H)  f32  (b_ih + b_hh, backward)
                       whh_f_ref,  # (H, 4H)  bf16
                       whh_b_ref,  # (H, 4H)  bf16
                       fcw_ref,    # (2H, Op) bf16
                       fcb_ref,    # (1, Op)  f32
                       out_ref,    # (Bp, Op) f32
                       h_f_ref, c_f_ref, h_b_ref, c_b_ref,  # (Bp, H) f32 VMEM scratch
                       *, t_total, unroll):
    t_chunk, b_pad, _ = x_f_ref.shape
    H = whh_f_ref.shape[0]
    chunk = pl.program_id(0)

    @pl.when(chunk == 0)
    def _init():
        z = jnp.zeros((b_pad, H), jnp.float32)
        h_f_ref[...] = z
        c_f_ref[...] = z
        h_b_ref[...] = z
        c_b_ref[...] = z

    # Weights are VMEM-resident across the whole grid (constant index_map); load once here.
    wih_f = wih_f_ref[...]
    wih_b = wih_b_ref[...]
    b_f = b_f_ref[...]
    b_b = b_b_ref[...]
    whh_f = whh_f_ref[...]
    whh_b = whh_b_ref[...]

    def cell(g, c):
        i = jax.nn.sigmoid(g[:, 0:H])
        f = jax.nn.sigmoid(g[:, H:2 * H])
        gg = jnp.tanh(g[:, 2 * H:3 * H])
        o = jax.nn.sigmoid(g[:, 3 * H:4 * H])
        c_new = f * c + i * gg
        h_new = o * jnp.tanh(c_new)
        return h_new, c_new

    def body(t, carry):
        h_f, c_f, h_b, c_b = carry
        # In-kernel input projection: K = W (tiny weight push), no h dependence so the
        # scheduler can overlap it with the previous step's recurrent work when unrolled.
        gx_f = jnp.dot(x_f_ref[t].astype(jnp.bfloat16), wih_f,
                       preferred_element_type=jnp.float32) + b_f
        gx_b = jnp.dot(x_b_ref[t].astype(jnp.bfloat16), wih_b,
                       preferred_element_type=jnp.float32) + b_b
        # Un-fused per-direction recurrent matmuls (no zero-filled block-diagonal RHS).
        gr_f = jnp.dot(h_f.astype(jnp.bfloat16), whh_f,
                       preferred_element_type=jnp.float32)
        gr_b = jnp.dot(h_b.astype(jnp.bfloat16), whh_b,
                       preferred_element_type=jnp.float32)
        h_f_n, c_f_n = cell(gx_f + gr_f, c_f)
        h_b_n, c_b_n = cell(gx_b + gr_b, c_b)
        # Mask padded tail timesteps of the (ragged) last chunk.
        valid = (chunk * t_chunk + t) < t_total
        h_f = jnp.where(valid, h_f_n, h_f)
        c_f = jnp.where(valid, c_f_n, c_f)
        h_b = jnp.where(valid, h_b_n, h_b)
        c_b = jnp.where(valid, c_b_n, c_b)
        return h_f, c_f, h_b, c_b

    carry0 = (h_f_ref[...], c_f_ref[...], h_b_ref[...], c_b_ref[...])
    h_f, c_f, h_b, c_b = lax.fori_loop(0, t_chunk, body, carry0, unroll=unroll)
    h_f_ref[...] = h_f
    c_f_ref[...] = c_f
    h_b_ref[...] = h_b
    c_b_ref[...] = c_b

    @pl.when(chunk == pl.num_programs(0) - 1)
    def _finalize():
        # h_n = cat(h_n[0], h_n[1]) ; ReLU ; (dropout == identity at inference) ; fc
        h_cat = jnp.maximum(jnp.concatenate([h_f, h_b], axis=-1), 0.0)
        out_ref[...] = (jnp.dot(h_cat.astype(jnp.bfloat16), fcw_ref[...],
                                preferred_element_type=jnp.float32)
                        + fcb_ref[...])


def init_params(key, window_size, output_dim, hidden=HIDDEN):
    """Deterministic synthetic params. LSTM weights stored transposed: (in, 4H)."""
    ks = jax.random.split(key, 10)
    s = 1.0 / jnp.sqrt(hidden)

    def u(k, shape):
        return jax.random.uniform(k, shape, jnp.float32, -s, s)

    return dict(
        # forward direction
        w_ih_f=u(ks[0], (window_size, 4 * hidden)),
        w_hh_f=u(ks[1], (hidden, 4 * hidden)),
        b_f=u(ks[2], (1, 4 * hidden)) + u(ks[3], (1, 4 * hidden)),   # b_ih + b_hh
        # backward direction
        w_ih_b=u(ks[4], (window_size, 4 * hidden)),
        w_hh_b=u(ks[5], (hidden, 4 * hidden)),
        b_b=u(ks[6], (1, 4 * hidden)) + u(ks[7], (1, 4 * hidden)),
        # fc
        fc_w=u(ks[8], (2 * hidden, output_dim)),
        fc_b=u(ks[9], (1, output_dim)),
    )


def rnn_baseline_forward(x, params, window_size, output_dim, hidden=HIDDEN, t_chunk=8):
    B, L = x.shape
    rem = L % window_size
    if rem:                               # x[:, :-(L % window_size) or None]
        x = x[:, :L - rem]
    T = x.shape[1] // window_size
    H = hidden
    W = window_size

    # (B, L) -> (T, B, W) time-major f32; backward direction consumes reversed time order.
    x_tbw = jnp.transpose(x.reshape(B, T, W), (1, 0, 2)).astype(jnp.float32)
    x_rev = x_tbw[::-1]

    # --- batch padding: >=8 rows so sublanes / MXU LHS rows are occupied ---
    b_pad = max(8, _round_up(B, 8))
    if b_pad != B:
        pad_rows = jnp.zeros((T, b_pad - B, W), jnp.float32)
        x_tbw = jnp.concatenate([x_tbw, pad_rows], axis=1)
        x_rev = jnp.concatenate([x_rev, pad_rows], axis=1)

    # --- time chunking (grid over chunks); pad T up, padded steps are masked in-kernel ---
    t_chunk = max(1, min(t_chunk, T))
    n_chunks = pl.cdiv(T, t_chunk)
    t_pad_amt = n_chunks * t_chunk - T
    if t_pad_amt:
        pad_t = jnp.zeros((t_pad_amt, b_pad, W), jnp.float32)
        x_tbw = jnp.concatenate([x_tbw, pad_t], axis=0)
        x_rev = jnp.concatenate([x_rev, pad_t], axis=0)

    # --- weights: bf16 MXU operands, f32 biases ---
    wih_f = params["w_ih_f"].astype(jnp.bfloat16)
    wih_b = params["w_ih_b"].astype(jnp.bfloat16)
    b_f = params["b_f"].astype(jnp.float32)
    b_b = params["b_b"].astype(jnp.float32)
    whh_f = params["w_hh_f"].astype(jnp.bfloat16)
    whh_b = params["w_hh_b"].astype(jnp.bfloat16)

    # Lane-dense fc output: pad output_dim up to a multiple of 128 (unmasked vst).
    o_pad = _round_up(max(output_dim, 1), 128)
    fcw = jnp.zeros((2 * H, o_pad), jnp.float32).at[:, :output_dim].set(params["fc_w"])
    fcw = fcw.astype(jnp.bfloat16)
    fcb = jnp.zeros((1, o_pad), jnp.float32).at[:, :output_dim].set(params["fc_b"])

    # VMEM budget: 2 streamed x arrays x 2 pipeline buffers + resident weights/scratch.
    stream_bytes = 2 * 2 * t_chunk * b_pad * W * 4
    resident_bytes = ((wih_f.size + wih_b.size + whh_f.size + whh_b.size + fcw.size) * 2
                      + (b_f.size + b_b.size + fcb.size) * 4
                      + b_pad * o_pad * 4 + 4 * b_pad * H * 4)
    need = stream_bytes + resident_bytes
    # Cap v7x-safe (64 MiB physical VMEM); on v5e/v6e (128 MiB) this cap / t_chunk can be
    # raised (e.g. toward 96-112 MiB) for larger time chunks.
    vmem_limit = int(min(48 * 1024 * 1024, max(32 * 1024 * 1024, 2 * need)))

    def full_spec(a):  # whole-array block, constant index -> stays resident, no re-DMA
        return pl.BlockSpec(a.shape, lambda t: (0,) * a.ndim)

    x_spec = pl.BlockSpec((t_chunk, b_pad, W), lambda t: (t, 0, 0))

    kernel = functools.partial(
        _bi_lstm_fc_kernel,
        t_total=T,
        unroll=(t_chunk if t_chunk <= 8 else 4),   # partial unroll for long chunks
    )

    out = pl.pallas_call(
        kernel,
        out_shape=jax.ShapeDtypeStruct((b_pad, o_pad), jnp.float32),
        grid_spec=pltpu.PrefetchScalarGridSpec(
            num_scalar_prefetch=0,
            grid=(n_chunks,),
            in_specs=[x_spec, x_spec,
                      full_spec(wih_f), full_spec(wih_b),
                      full_spec(b_f), full_spec(b_b),
                      full_spec(whh_f), full_spec(whh_b),
                      full_spec(fcw), full_spec(fcb)],
            out_specs=pl.BlockSpec((b_pad, o_pad), lambda t: (0, 0)),
            scratch_shapes=[pltpu.VMEM((b_pad, H), jnp.float32),
                            pltpu.VMEM((b_pad, H), jnp.float32),
                            pltpu.VMEM((b_pad, H), jnp.float32),
                            pltpu.VMEM((b_pad, H), jnp.float32)],
        ),
        compiler_params=pltpu.CompilerParams(
            dimension_semantics=("arbitrary",),   # serial recurrence over time chunks
            vmem_limit_bytes=vmem_limit,
        ),
    )(x_tbw, x_rev, wih_f, wih_b, b_f, b_b, whh_f, whh_b, fcw, fcb)

    return out[:B, :output_dim]


def rnn_baseline_reference(x, params, window_size, output_dim, hidden=HIDDEN):
    """Pure-JAX f32 reference mirroring PyTorch LSTM semantics (for verification)."""
    B, L = x.shape
    rem = L % window_size
    if rem:
        x = x[:, :L - rem]
    T = x.shape[1] // window_size
    xs = x.reshape(B, T, window_size).astype(jnp.float32)

    def run_dir(seq, wih, whh, b):
        h = jnp.zeros((B, hidden), jnp.float32)
        c = jnp.zeros((B, hidden), jnp.float32)
        for t in range(seq.shape[1]):
            g = seq[:, t, :] @ wih + h @ whh + b
            i = jax.nn.sigmoid(g[:, 0:hidden])
            f = jax.nn.sigmoid(g[:, hidden:2 * hidden])
            gg = jnp.tanh(g[:, 2 * hidden:3 * hidden])
            o = jax.nn.sigmoid(g[:, 3 * hidden:4 * hidden])
            c = f * c + i * gg
            h = o * jnp.tanh(c)
        return h

    h_f = run_dir(xs, params["w_ih_f"], params["w_hh_f"], params["b_f"])
    h_b = run_dir(xs[:, ::-1, :], params["w_ih_b"], params["w_hh_b"], params["b_b"])
    h_cat = jnp.maximum(jnp.concatenate([h_f, h_b], axis=-1), 0.0)
    return h_cat @ params["fc_w"] + params["fc_b"]


if __name__ == "__main__":
    window_size = 8
    output_dim = 4
    B, L = 2, 67          # 67 % 8 == 3 -> trimmed to 64 -> T = 8 timesteps

    key = jax.random.PRNGKey(0)
    k_x, k_p = jax.random.split(key)
    x = jax.random.normal(k_x, (B, L), jnp.float32)
    params = init_params(k_p, window_size, output_dim)

    # t_chunk=3 -> grid of 3 time chunks (3 + 3 + 2 valid steps; ragged tail masked).
    out = rnn_baseline_forward(x, params, window_size, output_dim, t_chunk=3)
    out = jax.block_until_ready(out)

    ref = rnn_baseline_reference(x, params, window_size, output_dim)
    assert out.shape == (B, output_dim)
    # bf16 matmul operands (f32 accumulation) -> slightly looser tolerance vs f32 reference
    assert jnp.allclose(out, ref, atol=5e-2, rtol=5e-2), "mismatch vs reference"

    print("KERNEL_OK")
</pallas_src>

<mosaic_0001>
module attributes {stable_mosaic.version = 11 : i64} {
  func.func @_bi_lstm_fc_kernel(%arg0: i32, %arg1: memref<3x8x8xf32, #tpu.memory_space<vmem>>, %arg2: memref<3x8x8xf32, #tpu.memory_space<vmem>>, %arg3: memref<8x512xbf16, #tpu.memory_space<vmem>>, %arg4: memref<8x512xbf16, #tpu.memory_space<vmem>>, %arg5: memref<1x512xf32, #tpu.memory_space<vmem>>, %arg6: memref<1x512xf32, #tpu.memory_space<vmem>>, %arg7: memref<128x512xbf16, #tpu.memory_space<vmem>>, %arg8: memref<128x512xbf16, #tpu.memory_space<vmem>>, %arg9: memref<256x128xbf16, #tpu.memory_space<vmem>>, %arg10: memref<1x128xf32, #tpu.memory_space<vmem>>, %arg11: memref<8x128xf32, #tpu.memory_space<vmem>>, %arg12: memref<8x128xf32, #tpu.memory_space<vmem>>, %arg13: memref<8x128xf32, #tpu.memory_space<vmem>>, %arg14: memref<8x128xf32, #tpu.memory_space<vmem>>, %arg15: memref<8x128xf32, #tpu.memory_space<vmem>>) attributes {dimension_semantics = [#tpu.dimension_semantics<arbitrary>], iteration_bounds = array<i64: 3>, scalar_prefetch = 0 : i64, scratch_operands = 4 : i64, tpu.core_type = #tpu.core_type<tc>, window_params = [{transform_indices = @transform_0, window_bounds = array<i64: 3, 8, 8>}, {transform_indices = @transform_1, window_bounds = array<i64: 3, 8, 8>}, {pipeline_mode = #tpu.pipeline_mode<synchronous>, transform_indices = @transform_2, window_bounds = array<i64: 8, 512>}, {pipeline_mode = #tpu.pipeline_mode<synchronous>, transform_indices = @transform_3, window_bounds = array<i64: 8, 512>}, {pipeline_mode = #tpu.pipeline_mode<synchronous>, transform_indices = @transform_4, window_bounds = array<i64: 1, 512>}, {pipeline_mode = #tpu.pipeline_mode<synchronous>, transform_indices = @transform_5, window_bounds = array<i64: 1, 512>}, {pipeline_mode = #tpu.pipeline_mode<synchronous>, transform_indices = @transform_6, window_bounds = array<i64: 128, 512>}, {pipeline_mode = #tpu.pipeline_mode<synchronous>, transform_indices = @transform_7, window_bounds = array<i64: 128, 512>}, {pipeline_mode = #tpu.pipeline_mode<synchronous>, transform_indices = @transform_8, window_bounds = array<i64: 256, 128>}, {pipeline_mode = #tpu.pipeline_mode<synchronous>, transform_indices = @transform_9, window_bounds = array<i64: 1, 128>}, {pipeline_mode = #tpu.pipeline_mode<synchronous>, transform_indices = @transform_10, window_bounds = array<i64: 8, 128>}]} {
    %c0_i32 = arith.constant 0 : i32
    %0 = arith.cmpi eq, %arg0, %c0_i32 : i32
    %1 = arith.extui %0 : i1 to i32
    %c0_i32_0 = arith.constant 0 : i32
    %2 = arith.cmpi ne, %1, %c0_i32_0 : i32
    scf.if %2 {
      %cst_77 = arith.constant 0.000000e+00 : f32
      %251 = vector.broadcast %cst_77 : f32 to vector<8x128xf32>
      %c0_78 = arith.constant 0 : index
      %c0_79 = arith.constant 0 : index
      %252 = vector.load %arg12[%c0_78, %c0_79] : memref<8x128xf32, #tpu.memory_space<vmem>>, vector<8x128xf32>
      tpu.vector_store %arg12[%c0_78, %c0_79], %251 {strides = array<i32>} : memref<8x128xf32, #tpu.memory_space<vmem>>, vector<8x128xf32>,
      %c0_80 = arith.constant 0 : index
      %c0_81 = arith.constant 0 : index
      %253 = vector.load %arg13[%c0_80, %c0_81] : memref<8x128xf32, #tpu.memory_space<vmem>>, vector<8x128xf32>
      tpu.vector_store %arg13[%c0_80, %c0_81], %251 {strides = array<i32>} : memref<8x128xf32, #tpu.memory_space<vmem>>, vector<8x128xf32>,
      %c0_82 = arith.constant 0 : index
      %c0_83 = arith.constant 0 : index
      %254 = vector.load %arg14[%c0_82, %c0_83] : memref<8x128xf32, #tpu.memory_space<vmem>>, vector<8x128xf32>
      tpu.vector_store %arg14[%c0_82, %c0_83], %251 {strides = array<i32>} : memref<8x128xf32, #tpu.memory_space<vmem>>, vector<8x128xf32>,
      %c0_84 = arith.constant 0 : index
      %c0_85 = arith.constant 0 : index
      %255 = vector.load %arg15[%c0_84, %c0_85] : memref<8x128xf32, #tpu.memory_space<vmem>>, vector<8x128xf32>
      tpu.vector_store %arg15[%c0_84, %c0_85], %251 {strides = array<i32>} : memref<8x128xf32, #tpu.memory_space<vmem>>, vector<8x128xf32>,
    } else {
    }
    %c0 = arith.constant 0 : index
    %c0_1 = arith.constant 0 : index
    %3 = vector.load %arg3[%c0, %c0_1] : memref<8x512xbf16, #tpu.memory_space<vmem>>, vector<8x512xbf16>
    %c0_2 = arith.constant 0 : index
    %c0_3 = arith.constant 0 : index
    %4 = vector.load %arg4[%c0_2, %c0_3] : memref<8x512xbf16, #tpu.memory_space<vmem>>, vector<8x512xbf16>
    %c0_4 = arith.constant 0 : index
    %c0_5 = arith.constant 0 : index
    %5 = vector.load %arg5[%c0_4, %c0_5] : memref<1x512xf32, #tpu.memory_space<vmem>>, vector<1x512xf32>
    %c0_6 = arith.constant 0 : index
    %c0_7 = arith.constant 0 : index
    %6 = vector.load %arg6[%c0_6, %c0_7] : memref<1x512xf32, #tpu.memory_space<vmem>>, vector<1x512xf32>
    %c0_8 = arith.constant 0 : index
    %c0_9 = arith.constant 0 : index
    %7 = vector.load %arg7[%c0_8, %c0_9] : memref<128x512xbf16, #tpu.memory_space<vmem>>, vector<128x512xbf16>
    %c0_10 = arith.constant 0 : index
    %c0_11 = arith.constant 0 : index
    %8 = vector.load %arg8[%c0_10, %c0_11] : memref<128x512xbf16, #tpu.memory_space<vmem>>, vector<128x512xbf16>
    %c0_12 = arith.constant 0 : index
    %c0_13 = arith.constant 0 : index
    %9 = vector.load %arg12[%c0_12, %c0_13] : memref<8x128xf32, #tpu.memory_space<vmem>>, vector<8x128xf32>
    %c0_14 = arith.constant 0 : index
    %c0_15 = arith.constant 0 : index
    %10 = vector.load %arg13[%c0_14, %c0_15] : memref<8x128xf32, #tpu.memory_space<vmem>>, vector<8x128xf32>
    %c0_16 = arith.constant 0 : index
    %c0_17 = arith.constant 0 : index
    %11 = vector.load %arg14[%c0_16, %c0_17] : memref<8x128xf32, #tpu.memory_space<vmem>>, vector<8x128xf32>
    %c0_18 = arith.constant 0 : index
    %c0_19 = arith.constant 0 : index
    %12 = vector.load %arg15[%c0_18, %c0_19] : memref<8x128xf32, #tpu.memory_space<vmem>>, vector<8x128xf32>
    %c0_i32_20 = arith.constant 0 : i32
    %13 = arith.index_cast %c0_i32_20 : i32 to index
    %c0_21 = arith.constant 0 : index
    %c0_22 = arith.constant 0 : index
    %14 = vector.load %arg1[%13, %c0_21, %c0_22] : memref<3x8x8xf32, #tpu.memory_space<vmem>>, vector<1x8x8xf32>
    %15 = vector.shape_cast %14 : vector<1x8x8xf32> to vector<8x8xf32>
    %16 = arith.truncf %15 : vector<8x8xf32> to vector<8x8xbf16>
    %cst = arith.constant dense<0.000000e+00> : vector<8x512xf32>
    %17 = tpu.matmul %16, %3, %cst {dimension_numbers = #tpu.dot_dimension_numbers<[1], [0], [0], [1], [0, 0, 1, 1], [], []>} : vector<8x8xbf16>, vector<8x512xbf16>, vector<8x512xf32> -> vector<8x512xf32>
    %18 = vector.broadcast %5 : vector<1x512xf32> to vector<8x512xf32>
    %19 = arith.addf %17, %18 : vector<8x512xf32>
    %20 = arith.index_cast %c0_i32_20 : i32 to index
    %c0_23 = arith.constant 0 : index
    %c0_24 = arith.constant 0 : index
    %21 = vector.load %arg2[%20, %c0_23, %c0_24] : memref<3x8x8xf32, #tpu.memory_space<vmem>>, vector<1x8x8xf32>
    %22 = vector.shape_cast %21 : vector<1x8x8xf32> to vector<8x8xf32>
    %23 = arith.truncf %22 : vector<8x8xf32> to vector<8x8xbf16>
    %cst_25 = arith.constant dense<0.000000e+00> : vector<8x512xf32>
    %24 = tpu.matmul %23, %4, %cst_25 {dimension_numbers = #tpu.dot_dimension_numbers<[1], [0], [0], [1], [0, 0, 1, 1], [], []>} : vector<8x8xbf16>, vector<8x512xbf16>, vector<8x512xf32> -> vector<8x512xf32>
    %25 = vector.broadcast %6 : vector<1x512xf32> to vector<8x512xf32>
    %26 = arith.addf %24, %25 : vector<8x512xf32>
    %27 = arith.truncf %9 : vector<8x128xf32> to vector<8x128xbf16>
    %cst_26 = arith.constant dense<0.000000e+00> : vector<8x512xf32>
    %28 = tpu.matmul %27, %7, %cst_26 {dimension_numbers = #tpu.dot_dimension_numbers<[1], [0], [0], [1], [0, 0, 1, 1], [], []>} : vector<8x128xbf16>, vector<128x512xbf16>, vector<8x512xf32> -> vector<8x512xf32>
    %29 = arith.truncf %11 : vector<8x128xf32> to vector<8x128xbf16>
    %cst_27 = arith.constant dense<0.000000e+00> : vector<8x512xf32>
    %30 = tpu.matmul %29, %8, %cst_27 {dimension_numbers = #tpu.dot_dimension_numbers<[1], [0], [0], [1], [0, 0, 1, 1], [], []>} : vector<8x128xbf16>, vector<128x512xbf16>, vector<8x512xf32> -> vector<8x512xf32>
    %31 = arith.addf %19, %28 : vector<8x512xf32>
    %32 = vector.extract_strided_slice %31 {offsets = [0, 0], sizes = [8, 128], strides = [1, 1]} : vector<8x512xf32> to vector<8x128xf32>
    %33 = arith.negf %32 : vector<8x128xf32>
    %34 = math.exp %33 : vector<8x128xf32>
    %cst_28 = arith.constant 1.000000e+00 : f32
    %35 = vector.broadcast %cst_28 : f32 to vector<8x128xf32>
    %36 = arith.addf %35, %34 : vector<8x128xf32>
    %37 = arith.divf %35, %36 : vector<8x128xf32>
    %38 = vector.extract_strided_slice %31 {offsets = [0, 128], sizes = [8, 128], strides = [1, 1]} : vector<8x512xf32> to vector<8x128xf32>
    %39 = arith.negf %38 : vector<8x128xf32>
    %40 = math.exp %39 : vector<8x128xf32>
    %cst_29 = arith.constant 1.000000e+00 : f32
    %41 = vector.broadcast %cst_29 : f32 to vector<8x128xf32>
    %42 = arith.addf %41, %40 : vector<8x128xf32>
    %43 = arith.divf %41, %42 : vector<8x128xf32>
    %44 = vector.extract_strided_slice %31 {offsets = [0, 256], sizes = [8, 128], strides = [1, 1]} : vector<8x512xf32> to vector<8x128xf32>
    %45 = math.tanh %44 : vector<8x128xf32>
    %46 = vector.extract_strided_slice %31 {offsets = [0, 384], sizes = [8, 128], strides = [1, 1]} : vector<8x512xf32> to vector<8x128xf32>
    %47 = arith.negf %46 : vector<8x128xf32>
    %48 = math.exp %47 : vector<8x128xf32>
    %cst_30 = arith.constant 1.000000e+00 : f32
    %49 = vector.broadcast %cst_30 : f32 to vector<8x128xf32>
    %50 = arith.addf %49, %48 : vector<8x128xf32>
    %51 = arith.divf %49, %50 : vector<8x128xf32>
    %52 = arith.mulf %43, %10 : vector<8x128xf32>
    %53 = arith.mulf %37, %45 : vector<8x128xf32>
    %54 = arith.addf %52, %53 : vector<8x128xf32>
    %55 = math.tanh %54 : vector<8x128xf32>
    %56 = arith.mulf %51, %55 : vector<8x128xf32>
    %57 = arith.addf %26, %30 : vector<8x512xf32>
    %58 = vector.extract_strided_slice %57 {offsets = [0, 0], sizes = [8, 128], strides = [1, 1]} : vector<8x512xf32> to vector<8x128xf32>
    %59 = arith.negf %58 : vector<8x128xf32>
    %60 = math.exp %59 : vector<8x128xf32>
    %cst_31 = arith.constant 1.000000e+00 : f32
    %61 = vector.broadcast %cst_31 : f32 to vector<8x128xf32>
    %62 = arith.addf %61, %60 : vector<8x128xf32>
    %63 = arith.divf %61, %62 : vector<8x128xf32>
    %64 = vector.extract_strided_slice %57 {offsets = [0, 128], sizes = [8, 128], strides = [1, 1]} : vector<8x512xf32> to vector<8x128xf32>
    %65 = arith.negf %64 : vector<8x128xf32>
    %66 = math.exp %65 : vector<8x128xf32>
    %cst_32 = arith.constant 1.000000e+00 : f32
    %67 = vector.broadcast %cst_32 : f32 to vector<8x128xf32>
    %68 = arith.addf %67, %66 : vector<8x128xf32>
    %69 = arith.divf %67, %68 : vector<8x128xf32>
    %70 = vector.extract_strided_slice %57 {offsets = [0, 256], sizes = [8, 128], strides = [1, 1]} : vector<8x512xf32> to vector<8x128xf32>
    %71 = math.tanh %70 : vector<8x128xf32>
    %72 = vector.extract_strided_slice %57 {offsets = [0, 384], sizes = [8, 128], strides = [1, 1]} : vector<8x512xf32> to vector<8x128xf32>
    %73 = arith.negf %72 : vector<8x128xf32>
    %74 = math.exp %73 : vector<8x128xf32>
    %cst_33 = arith.constant 1.000000e+00 : f32
    %75 = vector.broadcast %cst_33 : f32 to vector<8x128xf32>
    %76 = arith.addf %75, %74 : vector<8x128xf32>
    %77 = arith.divf %75, %76 : vector<8x128xf32>
    %78 = arith.mulf %69, %12 : vector<8x128xf32>
    %79 = arith.mulf %63, %71 : vector<8x128xf32>
    %80 = arith.addf %78, %79 : vector<8x128xf32>
    %81 = math.tanh %80 : vector<8x128xf32>
    %82 = arith.mulf %77, %81 : vector<8x128xf32>
    %c3_i32 = arith.constant 3 : i32
    %83 = arith.muli %arg0, %c3_i32 : i32
    %84 = arith.addi %83, %c0_i32_20 : i32
    %c8_i32 = arith.constant 8 : i32
    %85 = arith.cmpi slt, %84, %c8_i32 : i32
    %86 = arith.select %85, %56, %9 : vector<8x128xf32>
    %87 = arith.select %85, %54, %10 : vector<8x128xf32>
    %88 = arith.select %85, %82, %11 : vector<8x128xf32>
    %89 = arith.select %85, %80, %12 : vector<8x128xf32>
    %c1_i32 = arith.constant 1 : i32
    %90 = arith.index_cast %c1_i32 : i32 to index
    %c0_34 = arith.constant 0 : index
    %c0_35 = arith.constant 0 : index
    %91 = vector.load %arg1[%90, %c0_34, %c0_35] : memref<3x8x8xf32, #tpu.memory_space<vmem>>, vector<1x8x8xf32>
    %92 = vector.shape_cast %91 : vector<1x8x8xf32> to vector<8x8xf32>
    %93 = arith.truncf %92 : vector<8x8xf32> to vector<8x8xbf16>
    %cst_36 = arith.constant dense<0.000000e+00> : vector<8x512xf32>
    %94 = tpu.matmul %93, %3, %cst_36 {dimension_numbers = #tpu.dot_dimension_numbers<[1], [0], [0], [1], [0, 0, 1, 1], [], []>} : vector<8x8xbf16>, vector<8x512xbf16>, vector<8x512xf32> -> vector<8x512xf32>
    %95 = vector.broadcast %5 : vector<1x512xf32> to vector<8x512xf32>
    %96 = arith.addf %94, %95 : vector<8x512xf32>
    %97 = arith.index_cast %c1_i32 : i32 to index
    %c0_37 = arith.constant 0 : index
    %c0_38 = arith.constant 0 : index
    %98 = vector.load %arg2[%97, %c0_37, %c0_38] : memref<3x8x8xf32, #tpu.memory_space<vmem>>, vector<1x8x8xf32>
    %99 = vector.shape_cast %98 : vector<1x8x8xf32> to vector<8x8xf32>
    %100 = arith.truncf %99 : vector<8x8xf32> to vector<8x8xbf16>
    %cst_39 = arith.constant dense<0.000000e+00> : vector<8x512xf32>
    %101 = tpu.matmul %100, %4, %cst_39 {dimension_numbers = #tpu.dot_dimension_numbers<[1], [0], [0], [1], [0, 0, 1, 1], [], []>} : vector<8x8xbf16>, vector<8x512xbf16>, vector<8x512xf32> -> vector<8x512xf32>
    %102 = vector.broadcast %6 : vector<1x512xf32> to vector<8x512xf32>
    %103 = arith.addf %101, %102 : vector<8x512xf32>
    %104 = arith.truncf %86 : vector<8x128xf32> to vector<8x128xbf16>
    %cst_40 = arith.constant dense<0.000000e+00> : vector<8x512xf32>
    %105 = tpu.matmul %104, %7, %cst_40 {dimension_numbers = #tpu.dot_dimension_numbers<[1], [0], [0], [1], [0, 0, 1, 1], [], []>} : vector<8x128xbf16>, vector<128x512xbf16>, vector<8x512xf32> -> vector<8x512xf32>
    %106 = arith.truncf %88 : vector<8x128xf32> to vector<8x128xbf16>
    %cst_41 = arith.constant dense<0.000000e+00> : vector<8x512xf32>
    %107 = tpu.matmul %106, %8, %cst_41 {dimension_numbers = #tpu.dot_dimension_numbers<[1], [0], [0], [1], [0, 0, 1, 1], [], []>} : vector<8x128xbf16>, vector<128x512xbf16>, vector<8x512xf32> -> vector<8x512xf32>
    %108 = arith.addf %96, %105 : vector<8x512xf32>
    %109 = vector.extract_strided_slice %108 {offsets = [0, 0], sizes = [8, 128], strides = [1, 1]} : vector<8x512xf32> to vector<8x128xf32>
    %110 = arith.negf %109 : vector<8x128xf32>
    %111 = math.exp %110 : vector<8x128xf32>
    %cst_42 = arith.constant 1.000000e+00 : f32
    %112 = vector.broadcast %cst_42 : f32 to vector<8x128xf32>
    %113 = arith.addf %112, %111 : vector<8x128xf32>
    %114 = arith.divf %112, %113 : vector<8x128xf32>
    %115 = vector.extract_strided_slice %108 {offsets = [0, 128], sizes = [8, 128], strides = [1, 1]} : vector<8x512xf32> to vector<8x128xf32>
    %116 = arith.negf %115 : vector<8x128xf32>
    %117 = math.exp %116 : vector<8x128xf32>
    %cst_43 = arith.constant 1.000000e+00 : f32
    %118 = vector.broadcast %cst_43 : f32 to vector<8x128xf32>
    %119 = arith.addf %118, %117 : vector<8x128xf32>
    %120 = arith.divf %118, %119 : vector<8x128xf32>
    %121 = vector.extract_strided_slice %108 {offsets = [0, 256], sizes = [8, 128], strides = [1, 1]} : vector<8x512xf32> to vector<8x128xf32>
    %122 = math.tanh %121 : vector<8x128xf32>
    %123 = vector.extract_strided_slice %108 {offsets = [0, 384], sizes = [8, 128], strides = [1, 1]} : vector<8x512xf32> to vector<8x128xf32>
    %124 = arith.negf %123 : vector<8x128xf32>
    %125 = math.exp %124 : vector<8x128xf32>
    %cst_44 = arith.constant 1.000000e+00 : f32
    %126 = vector.broadcast %cst_44 : f32 to vector<8x128xf32>
    %127 = arith.addf %126, %125 : vector<8x128xf32>
    %128 = arith.divf %126, %127 : vector<8x128xf32>
    %129 = arith.mulf %120, %87 : vector<8x128xf32>
    %130 = arith.mulf %114, %122 : vector<8x128xf32>
    %131 = arith.addf %129, %130 : vector<8x128xf32>
    %132 = math.tanh %131 : vector<8x128xf32>
    %133 = arith.mulf %128, %132 : vector<8x128xf32>
    %134 = arith.addf %103, %107 : vector<8x512xf32>
    %135 = vector.extract_strided_slice %134 {offsets = [0, 0], sizes = [8, 128], strides = [1, 1]} : vector<8x512xf32> to vector<8x128xf32>
    %136 = arith.negf %135 : vector<8x128xf32>
    %137 = math.exp %136 : vector<8x128xf32>
    %cst_45 = arith.constant 1.000000e+00 : f32
    %138 = vector.broadcast %cst_45 : f32 to vector<8x128xf32>
    %139 = arith.addf %138, %137 : vector<8x128xf32>
    %140 = arith.divf %138, %139 : vector<8x128xf32>
    %141 = vector.extract_strided_slice %134 {offsets = [0, 128], sizes = [8, 128], strides = [1, 1]} : vector<8x512xf32> to vector<8x128xf32>
    %142 = arith.negf %141 : vector<8x128xf32>
    %143 = math.exp %142 : vector<8x128xf32>
    %cst_46 = arith.constant 1.000000e+00 : f32
    %144 = vector.broadcast %cst_46 : f32 to vector<8x128xf32>
    %145 = arith.addf %144, %143 : vector<8x128xf32>
    %146 = arith.divf %144, %145 : vector<8x128xf32>
    %147 = vector.extract_strided_slice %134 {offsets = [0, 256], sizes = [8, 128], strides = [1, 1]} : vector<8x512xf32> to vector<8x128xf32>
    %148 = math.tanh %147 : vector<8x128xf32>
    %149 = vector.extract_strided_slice %134 {offsets = [0, 384], sizes = [8, 128], strides = [1, 1]} : vector<8x512xf32> to vector<8x128xf32>
    %150 = arith.negf %149 : vector<8x128xf32>
    %151 = math.exp %150 : vector<8x128xf32>
    %cst_47 = arith.constant 1.000000e+00 : f32
    %152 = vector.broadcast %cst_47 : f32 to vector<8x128xf32>
    %153 = arith.addf %152, %151 : vector<8x128xf32>
    %154 = arith.divf %152, %153 : vector<8x128xf32>
    %155 = arith.mulf %146, %89 : vector<8x128xf32>
    %156 = arith.mulf %140, %148 : vector<8x128xf32>
    %157 = arith.addf %155, %156 : vector<8x128xf32>
    %158 = math.tanh %157 : vector<8x128xf32>
    %159 = arith.mulf %154, %158 : vector<8x128xf32>
    %c3_i32_48 = arith.constant 3 : i32
    %160 = arith.muli %arg0, %c3_i32_48 : i32
    %161 = arith.addi %160, %c1_i32 : i32
    %c8_i32_49 = arith.constant 8 : i32
    %162 = arith.cmpi slt, %161, %c8_i32_49 : i32
    %163 = arith.select %162, %133, %86 : vector<8x128xf32>
    %164 = arith.select %162, %131, %87 : vector<8x128xf32>
    %165 = arith.select %162, %159, %88 : vector<8x128xf32>
    %166 = arith.select %162, %157, %89 : vector<8x128xf32>
    %c2_i32 = arith.constant 2 : i32
    %167 = arith.index_cast %c2_i32 : i32 to index
    %c0_50 = arith.constant 0 : index
    %c0_51 = arith.constant 0 : index
    %168 = vector.load %arg1[%167, %c0_50, %c0_51] : memref<3x8x8xf32, #tpu.memory_space<vmem>>, vector<1x8x8xf32>
    %169 = vector.shape_cast %168 : vector<1x8x8xf32> to vector<8x8xf32>
    %170 = arith.truncf %169 : vector<8x8xf32> to vector<8x8xbf16>
    %cst_52 = arith.constant dense<0.000000e+00> : vector<8x512xf32>
    %171 = tpu.matmul %170, %3, %cst_52 {dimension_numbers = #tpu.dot_dimension_numbers<[1], [0], [0], [1], [0, 0, 1, 1], [], []>} : vector<8x8xbf16>, vector<8x512xbf16>, vector<8x512xf32> -> vector<8x512xf32>
    %172 = vector.broadcast %5 : vector<1x512xf32> to vector<8x512xf32>
    %173 = arith.addf %171, %172 : vector<8x512xf32>
    %174 = arith.index_cast %c2_i32 : i32 to index
    %c0_53 = arith.constant 0 : index
    %c0_54 = arith.constant 0 : index
    %175 = vector.load %arg2[%174, %c0_53, %c0_54] : memref<3x8x8xf32, #tpu.memory_space<vmem>>, vector<1x8x8xf32>
    %176 = vector.shape_cast %175 : vector<1x8x8xf32> to vector<8x8xf32>
    %177 = arith.truncf %176 : vector<8x8xf32> to vector<8x8xbf16>
    %cst_55 = arith.constant dense<0.000000e+00> : vector<8x512xf32>
    %178 = tpu.matmul %177, %4, %cst_55 {dimension_numbers = #tpu.dot_dimension_numbers<[1], [0], [0], [1], [0, 0, 1, 1], [], []>} : vector<8x8xbf16>, vector<8x512xbf16>, vector<8x512xf32> -> vector<8x512xf32>
    %179 = vector.broadcast %6 : vector<1x512xf32> to vector<8x512xf32>
    %180 = arith.addf %178, %179 : vector<8x512xf32>
    %181 = arith.truncf %163 : vector<8x128xf32> to vector<8x128xbf16>
    %cst_56 = arith.constant dense<0.000000e+00> : vector<8x512xf32>
    %182 = tpu.matmul %181, %7, %cst_56 {dimension_numbers = #tpu.dot_dimension_numbers<[1], [0], [0], [1], [0, 0, 1, 1], [], []>} : vector<8x128xbf16>, vector<128x512xbf16>, vector<8x512xf32> -> vector<8x512xf32>
    %183 = arith.truncf %165 : vector<8x128xf32> to vector<8x128xbf16>
    %cst_57 = arith.constant dense<0.000000e+00> : vector<8x512xf32>
    %184 = tpu.matmul %183, %8, %cst_57 {dimension_numbers = #tpu.dot_dimension_numbers<[1], [0], [0], [1], [0, 0, 1, 1], [], []>} : vector<8x128xbf16>, vector<128x512xbf16>, vector<8x512xf32> -> vector<8x512xf32>
    %185 = arith.addf %173, %182 : vector<8x512xf32>
    %186 = vector.extract_strided_slice %185 {offsets = [0, 0], sizes = [8, 128], strides = [1, 1]} : vector<8x512xf32> to vector<8x128xf32>
    %187 = arith.negf %186 : vector<8x128xf32>
    %188 = math.exp %187 : vector<8x128xf32>
    %cst_58 = arith.constant 1.000000e+00 : f32
    %189 = vector.broadcast %cst_58 : f32 to vector<8x128xf32>
    %190 = arith.addf %189, %188 : vector<8x128xf32>
    %191 = arith.divf %189, %190 : vector<8x128xf32>
    %192 = vector.extract_strided_slice %185 {offsets = [0, 128], sizes = [8, 128], strides = [1, 1]} : vector<8x512xf32> to vector<8x128xf32>
    %193 = arith.negf %192 : vector<8x128xf32>
    %194 = math.exp %193 : vector<8x128xf32>
    %cst_59 = arith.constant 1.000000e+00 : f32
    %195 = vector.broadcast %cst_59 : f32 to vector<8x128xf32>
    %196 = arith.addf %195, %194 : vector<8x128xf32>
    %197 = arith.divf %195, %196 : vector<8x128xf32>
    %198 = vector.extract_strided_slice %185 {offsets = [0, 256], sizes = [8, 128], strides = [1, 1]} : vector<8x512xf32> to vector<8x128xf32>
    %199 = math.tanh %198 : vector<8x128xf32>
    %200 = vector.extract_strided_slice %185 {offsets = [0, 384], sizes = [8, 128], strides = [1, 1]} : vector<8x512xf32> to vector<8x128xf32>
    %201 = arith.negf %200 : vector<8x128xf32>
    %202 = math.exp %201 : vector<8x128xf32>
    %cst_60 = arith.constant 1.000000e+00 : f32
    %203 = vector.broadcast %cst_60 : f32 to vector<8x128xf32>
    %204 = arith.addf %203, %202 : vector<8x128xf32>
    %205 = arith.divf %203, %204 : vector<8x128xf32>
    %206 = arith.mulf %197, %164 : vector<8x128xf32>
    %207 = arith.mulf %191, %199 : vector<8x128xf32>
    %208 = arith.addf %206, %207 : vector<8x128xf32>
    %209 = math.tanh %208 : vector<8x128xf32>
    %210 = arith.mulf %205, %209 : vector<8x128xf32>
    %211 = arith.addf %180, %184 : vector<8x512xf32>
    %212 = vector.extract_strided_slice %211 {offsets = [0, 0], sizes = [8, 128], strides = [1, 1]} : vector<8x512xf32> to vector<8x128xf32>
    %213 = arith.negf %212 : vector<8x128xf32>
    %214 = math.exp %213 : vector<8x128xf32>
    %cst_61 = arith.constant 1.000000e+00 : f32
    %215 = vector.broadcast %cst_61 : f32 to vector<8x128xf32>
    %216 = arith.addf %215, %214 : vector<8x128xf32>
    %217 = arith.divf %215, %216 : vector<8x128xf32>
    %218 = vector.extract_strided_slice %211 {offsets = [0, 128], sizes = [8, 128], strides = [1, 1]} : vector<8x512xf32> to vector<8x128xf32>
    %219 = arith.negf %218 : vector<8x128xf32>
    %220 = math.exp %219 : vector<8x128xf32>
    %cst_62 = arith.constant 1.000000e+00 : f32
    %221 = vector.broadcast %cst_62 : f32 to vector<8x128xf32>
    %222 = arith.addf %221, %220 : vector<8x128xf32>
    %223 = arith.divf %221, %222 : vector<8x128xf32>
    %224 = vector.extract_strided_slice %211 {offsets = [0, 256], sizes = [8, 128], strides = [1, 1]} : vector<8x512xf32> to vector<8x128xf32>
    %225 = math.tanh %224 : vector<8x128xf32>
    %226 = vector.extract_strided_slice %211 {offsets = [0, 384], sizes = [8, 128], strides = [1, 1]} : vector<8x512xf32> to vector<8x128xf32>
    %227 = arith.negf %226 : vector<8x128xf32>
    %228 = math.exp %227 : vector<8x128xf32>
    %cst_63 = arith.constant 1.000000e+00 : f32
    %229 = vector.broadcast %cst_63 : f32 to vector<8x128xf32>
    %230 = arith.addf %229, %228 : vector<8x128xf32>
    %231 = arith.divf %229, %230 : vector<8x128xf32>
    %232 = arith.mulf %223, %166 : vector<8x128xf32>
    %233 = arith.mulf %217, %225 : vector<8x128xf32>
    %234 = arith.addf %232, %233 : vector<8x128xf32>
    %235 = math.tanh %234 : vector<8x128xf32>
    %236 = arith.mulf %231, %235 : vector<8x128xf32>
    %c3_i32_64 = arith.constant 3 : i32
    %237 = arith.muli %arg0, %c3_i32_64 : i32
    %238 = arith.addi %237, %c2_i32 : i32
    %c8_i32_65 = arith.constant 8 : i32
    %239 = arith.cmpi slt, %238, %c8_i32_65 : i32
    %240 = arith.select %239, %210, %163 : vector<8x128xf32>
    %241 = arith.select %239, %208, %164 : vector<8x128xf32>
    %242 = arith.select %239, %236, %165 : vector<8x128xf32>
    %243 = arith.select %239, %234, %166 : vector<8x128xf32>
    %c3_i32_66 = arith.constant 3 : i32
    %c0_67 = arith.constant 0 : index
    %c0_68 = arith.constant 0 : index
    %244 = vector.load %arg12[%c0_67, %c0_68] : memref<8x128xf32, #tpu.memory_space<vmem>>, vector<8x128xf32>
    tpu.vector_store %arg12[%c0_67, %c0_68], %240 {strides = array<i32>} : memref<8x128xf32, #tpu.memory_space<vmem>>, vector<8x128xf32>,
    %c0_69 = arith.constant 0 : index
    %c0_70 = arith.constant 0 : index
    %245 = vector.load %arg13[%c0_69, %c0_70] : memref<8x128xf32, #tpu.memory_space<vmem>>, vector<8x128xf32>
    tpu.vector_store %arg13[%c0_69, %c0_70], %241 {strides = array<i32>} : memref<8x128xf32, #tpu.memory_space<vmem>>, vector<8x128xf32>,
    %c0_71 = arith.constant 0 : index
    %c0_72 = arith.constant 0 : index
    %246 = vector.load %arg14[%c0_71, %c0_72] : memref<8x128xf32, #tpu.memory_space<vmem>>, vector<8x128xf32>
    tpu.vector_store %arg14[%c0_71, %c0_72], %242 {strides = array<i32>} : memref<8x128xf32, #tpu.memory_space<vmem>>, vector<8x128xf32>,
    %c0_73 = arith.constant 0 : index
    %c0_74 = arith.constant 0 : index
    %247 = vector.load %arg15[%c0_73, %c0_74] : memref<8x128xf32, #tpu.memory_space<vmem>>, vector<8x128xf32>
    tpu.vector_store %arg15[%c0_73, %c0_74], %243 {strides = array<i32>} : memref<8x128xf32, #tpu.memory_space<vmem>>, vector<8x128xf32>,
    %c2_i32_75 = arith.constant 2 : i32
    %248 = arith.cmpi eq, %arg0, %c2_i32_75 : i32
    %249 = arith.extui %248 : i1 to i32
    %c0_i32_76 = arith.constant 0 : i32
    %250 = arith.cmpi ne, %249, %c0_i32_76 : i32
    scf.if %250 {
      %251 = tpu.concatenate %240, %242 in 1 : vector<8x128xf32>, vector<8x128xf32> -> vector<8x256xf32>
      %cst_77 = arith.constant 0.000000e+00 : f32
      %252 = vector.broadcast %cst_77 : f32 to vector<8x256xf32>
      %253 = arith.maximumf %251, %252 : vector<8x256xf32>
      %254 = arith.truncf %253 : vector<8x256xf32> to vector<8x256xbf16>
      %c0_78 = arith.constant 0 : index
      %c0_79 = arith.constant 0 : index
      %255 = vector.load %arg9[%c0_78, %c0_79] : memref<256x128xbf16, #tpu.memory_space<vmem>>, vector<256x128xbf16>
      %cst_80 = arith.constant dense<0.000000e+00> : vector<8x128xf32>
      %256 = tpu.matmul %254, %255, %cst_80 {dimension_numbers = #tpu.dot_dimension_numbers<[1], [0], [0], [1], [0, 0, 1, 1], [], []>} : vector<8x256xbf16>, vector<256x128xbf16>, vector<8x128xf32> -> vector<8x128xf32>
      %c0_81 = arith.constant 0 : index
      %c0_82 = arith.constant 0 : index
      %257 = vector.load %arg10[%c0_81, %c0_82] : memref<1x128xf32, #tpu.memory_space<vmem>>, vector<1x128xf32>
      %258 = vector.broadcast %257 : vector<1x128xf32> to vector<8x128xf32>
      %259 = arith.addf %256, %258 : vector<8x128xf32>
      %c0_83 = arith.constant 0 : index
      %c0_84 = arith.constant 0 : index
      %260 = vector.load %arg11[%c0_83, %c0_84] : memref<8x128xf32, #tpu.memory_space<vmem>>, vector<8x128xf32>
      tpu.vector_store %arg11[%c0_83, %c0_84], %259 {strides = array<i32>} : memref<8x128xf32, #tpu.memory_space<vmem>>, vector<8x128xf32>,
    } else {
    }
    return
  }
  func.func @transform_0(%arg0: i32) -> (i32, i32, i32) {
    %c0_i32 = arith.constant 0 : i32
    %c0_i32_0 = arith.constant 0 : i32
    %c0_i32_1 = arith.constant 0 : i32
    return %arg0, %c0_i32, %c0_i32_0 : i32, i32, i32
  }
  func.func @transform_1(%arg0: i32) -> (i32, i32, i32) {
    %c0_i32 = arith.constant 0 : i32
    %c0_i32_0 = arith.constant 0 : i32
    %c0_i32_1 = arith.constant 0 : i32
    return %arg0, %c0_i32, %c0_i32_0 : i32, i32, i32
  }
  func.func @transform_2(%arg0: i32) -> (i32, i32) {
    %c0_i32 = arith.constant 0 : i32
    %c0_i32_0 = arith.constant 0 : i32
    %c0_i32_1 = arith.constant 0 : i32
    return %c0_i32, %c0_i32_0 : i32, i32
  }
  func.func @transform_3(%arg0: i32) -> (i32, i32) {
    %c0_i32 = arith.constant 0 : i32
    %c0_i32_0 = arith.constant 0 : i32
    %c0_i32_1 = arith.constant 0 : i32
    return %c0_i32, %c0_i32_0 : i32, i32
  }
  func.func @transform_4(%arg0: i32) -> (i32, i32) {
    %c0_i32 = arith.constant 0 : i32
    %c0_i32_0 = arith.constant 0 : i32
    %c0_i32_1 = arith.constant 0 : i32
    return %c0_i32, %c0_i32_0 : i32, i32
  }
  func.func @transform_5(%arg0: i32) -> (i32, i32) {
    %c0_i32 = arith.constant 0 : i32
    %c0_i32_0 = arith.constant 0 : i32
    %c0_i32_1 = arith.constant 0 : i32
    return %c0_i32, %c0_i32_0 : i32, i32
  }
  func.func @transform_6(%arg0: i32) -> (i32, i32) {
    %c0_i32 = arith.constant 0 : i32
    %c0_i32_0 = arith.constant 0 : i32
    %c0_i32_1 = arith.constant 0 : i32
    return %c0_i32, %c0_i32_0 : i32, i32
  }
  func.func @transform_7(%arg0: i32) -> (i32, i32) {
    %c0_i32 = arith.constant 0 : i32
    %c0_i32_0 = arith.constant 0 : i32
    %c0_i32_1 = arith.constant 0 : i32
    return %c0_i32, %c0_i32_0 : i32, i32
  }
  func.func @transform_8(%arg0: i32) -> (i32, i32) {
    %c0_i32 = arith.constant 0 : i32
    %c0_i32_0 = arith.constant 0 : i32
    %c0_i32_1 = arith.constant 0 : i32
    return %c0_i32, %c0_i32_0 : i32, i32
  }
  func.func @transform_9(%arg0: i32) -> (i32, i32) {
    %c0_i32 = arith.constant 0 : i32
    %c0_i32_0 = arith.constant 0 : i32
    %c0_i32_1 = arith.constant 0 : i32
    return %c0_i32, %c0_i32_0 : i32, i32
  }
  func.func @transform_10(%arg0: i32) -> (i32, i32) {
    %c0_i32 = arith.constant 0 : i32
    %c0_i32_0 = arith.constant 0 : i32
    %c0_i32_1 = arith.constant 0 : i32
    return %c0_i32, %c0_i32_0 : i32, i32
  }
}

</mosaic_0001>

<bundles_post_ra>
// kernel: tpu_custom_call.1
= control target key start
LH: loop header
LB: loop body
LE: loop exit
PB: predicated region body
PF: predicated region fallthrough
CT: control target
= control target key end

     0   :  { %15 = vsyncpa [#allocation7], 0  ;;  %s3929_s0 = inlined_call_operand.vmem [shape: f32[9,8,8], index: 0, kind: input, shape index: {}]   ;;  %s3930_s1 = inlined_call_operand.vmem [shape: f32[9,8,8], index: 1, kind: input, shape index: {}]   ;;  %s3931_s2 = inlined_call_operand.vmem [shape: bf16[8,512], index: 2, kind: input, shape index: {}]   ;;  %s3932_s3 = inlined_call_operand.vmem [shape: bf16[8,512], index: 3, kind: input, shape index: {}]   ;;  %s3933_s4 = inlined_call_operand.vmem [shape: f32[1,512], index: 4, kind: input, shape index: {}]   ;;  %s3934_s5 = inlined_call_operand.hbm [shape: f32[1,512], index: 5, kind: input, shape index: {}]   ;;  %s3935_s6 = inlined_call_operand.vmem [shape: bf16[128,512], index: 6, kind: input, shape index: {}]   ;;  %s3936_s7 = inlined_call_operand.hbm [shape: bf16[128,512], index: 7, kind: input, shape index: {}]   ;;  %s3937_s8 = inlined_call_operand.hbm [shape: bf16[256,128], index: 8, kind: input, shape index: {}]   ;;  %s3938_s9 = inlined_call_operand.vmem [shape: f32[1,128], index: 9, kind: input, shape index: {}]   ;;  %s3939_s10 = inlined_call_operand.hbm [shape: f32[8,128], index: 10, kind: output, shape index: {}]  }
   0x1   :  { %16 = vsyncpa [#allocation10], 0 }
   0x2   :  { %17 = vsyncpa [#allocation8], 0  ;;  %s3109_s13 = smov 0  }
   0x3 LB: > { %s3044_s14 = smov [#allocation9]   ;;  %s3115_s16 = sadd.s32 4294967295, %s3042_s13   ;;  %s3042_s13 = sphi %s3109_s13, %s23_s13  }
   0x4   : > { %s304_s15 = sshll.u32 %s3044_s14, 4  ;;  %p2400_p0 = scmp.ge.s32.totalorder %s3042_s13, 1  ;;  %s3121_s15 = int_to_ptr.vmem [resolvable:$true] %s304_s15 }
   0x5   : > { %p269_p1 = scmp.lt.s32.totalorder %s3042_s13, 4  ;;  %p2672_p3 = scmp.eq.s32.totalorder %s3115_s16, 0 }
   0x6   : > { %s3045_s18 = smov [#allocation6]   ;;  %s3046_s21 = smov [#allocation11]  }
   0x7   : > { %p3123_p4 = pnand %p2400_p0, %p269_p1  ;;  %s291_s19 = sshll.u32 %s3045_s18, 4  ;;  %s3129_s19 = int_to_ptr.vmem [resolvable:$true] %s291_s19 }
   0x8   : > { %s317_s22 = sshll.u32 %s3046_s21, 4  ;;  %s2914_s25 = scalar_lea.hbm %s3936_s7, 4096  ;;  %s3137_s22 = int_to_ptr.vmem [resolvable:$true] %s317_s22 }
   0x9   : > { %p2662_p5 = pneg %p3123_p4  ;;  %p2915_p7 = scmp.ne.s32.totalorder %s3936_s7, %s2914_s25 }
   0xa   : > { %p2921_p11 = scmp.lt.u32.totalorder %s2914_s25, %s3936_s7 }
   0xb   : > { %p3133_p6 = pnand %p2672_p3, %p2662_p5 }
   0xd   : > { %p3147_p8 = pneg %p3133_p6 }
   0xf   : > { %p2917_p9 = pnand %p3147_p8, %p2915_p7 }
  0x11   : > { %p2918_p10 = pneg %p2917_p9 }
  0x13   : > { %p2923_p12 = pnand %p2921_p11, %p2918_p10 }
  0x15   : > { %2926 = shalt.err (!%p2923_p12)
}
  0x16   : > { %s2927_s11 = scalar_lea.vmem %s3121_s15, 4096  ;;  %p2935_p5 = scmp.lt.s32.totalorder %s3121_s15, %s3121_s15 }
  0x17   : > { %p2928_p13 = scmp.ne.s32.totalorder %s3121_s15, %s2927_s11  ;;  %p2936_p2 = scmp.lt.s32.totalorder %s2927_s11, %s2927_s11 }
  0x19   : > { %p2930_p0 = pnand %p2928_p13, %p3147_p8  ;;  %p2937_p7 = por %p2936_p2, %p2935_p5 }
  0x1b   : > { %p2931_p1 = pneg %p2930_p0 }
  0x1d   : > { %p2938_p9 = pnand %p2937_p7, %p2931_p1 }
  0x1f   : > { %2941 = shalt.err (!%p2938_p9)
}
  0x20   : > { %s3047_s12 = smov 256   ;;  %s3048_s14 = smov 16  }
  0x21   : > { %2668 = dma.hbm_to_vmem [thread:$0]  (!%p3133_p6), %s3936_s7, 4096, %s3121_s15, [#allocation10], %s3047_s12, %s3047_s12, %s3048_s14  }
  0x22   : > { %s2942_s25 = scalar_lea.hbm %s3934_s5, 64 }
  0x23   : > { %p2943_p2 = scmp.ne.s32.totalorder %s3934_s5, %s2942_s25  ;;  %p2949_p12 = scmp.lt.u32.totalorder %s2942_s25, %s3934_s5 }
  0x25   : > { %p2945_p10 = pnand %p2943_p2, %p3147_p8 }
  0x27   : > { %p2946_p11 = pneg %p2945_p10 }
  0x29   : > { %p2951_p13 = pnand %p2949_p12, %p2946_p11 }
  0x2b   : > { %2954 = shalt.err (!%p2951_p13)
}
  0x2c   : > { %s2955_s15 = scalar_lea.vmem %s3129_s19, 64  ;;  %p2963_p7 = scmp.lt.s32.totalorder %s3129_s19, %s3129_s19 }
  0x2d   : > { %p2956_p0 = scmp.ne.s32.totalorder %s3129_s19, %s2955_s15  ;;  %p2964_p9 = scmp.lt.s32.totalorder %s2955_s15, %s2955_s15 }
  0x2f   : > { %p2958_p1 = pnand %p2956_p0, %p3147_p8  ;;  %p2965_p2 = por %p2964_p9, %p2963_p7 }
  0x31   : > { %p2959_p5 = pneg %p2958_p1 }
  0x33   : > { %p2966_p10 = pnand %p2965_p2, %p2959_p5 }
  0x35   : > { %2969 = shalt.err (!%p2966_p10)
}
  0x36   : > { %2665 = dma.hbm_to_vmem [thread:$0]  (!%p3133_p6), %s3934_s5, 64, %s3129_s19, [#allocation7]  }
  0x37   : > { %s2970_s21 = scalar_lea.hbm %s3937_s8, 2048 }
  0x38   : > { %p2971_p11 = scmp.ne.s32.totalorder %s3937_s8, %s2970_s21  ;;  %p2977_p0 = scmp.lt.u32.totalorder %s2970_s21, %s3937_s8 }
  0x3a   : > { %p2973_p12 = pnand %p2971_p11, %p3147_p8 }
  0x3c   : > { %p2974_p13 = pneg %p2973_p12 }
  0x3e   : > { %p2979_p1 = pnand %p2977_p0, %p2974_p13 }
  0x40   : > { %2982 = shalt.err (!%p2979_p1)
}
  0x41   : > { %s2983_s19 = scalar_lea.vmem %s3137_s22, 2048  ;;  %p2991_p2 = scmp.lt.s32.totalorder %s3137_s22, %s3137_s22 }
  0x42   : > { %p2984_p5 = scmp.ne.s32.totalorder %s3137_s22, %s2983_s19  ;;  %p2992_p10 = scmp.lt.s32.totalorder %s2983_s19, %s2983_s19 }
  0x44   : > { %p2986_p7 = pnand %p2984_p5, %p3147_p8  ;;  %p2993_p11 = por %p2992_p10, %p2991_p2 }
  0x46   : > { %p2987_p9 = pneg %p2986_p7 }
  0x48   : > { %p2994_p12 = pnand %p2993_p11, %p2987_p9 }
  0x4a   : > { %2997 = shalt.err (!%p2994_p12)
}
  0x4b   : > { %s3049_s27 = smov 64   ;;  %s3050_s29 = smov 4  }
  0x4c   : > { %2671 = dma.hbm_to_vmem [thread:$0]  (!%p3133_p6), %s3937_s8, 2048, %s3137_s22, [#allocation10], %s3049_s27, %s3049_s27, %s3050_s29  }
  0x4d   : > { %354 = sbr.rel (%p3123_p4) target bundleno = 1218 (0x4c2), region = 60 }
  0x54   : > { %3029 = dma.done.wait (%p2672_p3), [#allocation7], 64  }
  0x55   : > { %3031 = vsyncadd (%p2672_p3), [#allocation7], 4294967232 }
  0x56   : > { %3033 = dma.done.wait (%p2672_p3), [#allocation10], 6144  }
  0x57   : > { %3035 = vsyncadd (%p2672_p3), [#allocation10], 4294961152  ;;  %s3225_s20 = smul.u32 3, %s3115_s16  ;;  %p4004_p3 = scmp.ne.s32.totalorder %s3115_s16, 0 }
  0x58   : > { %v3051_v0 = vmov (!%p4004_p3), 0.0  }
  0x59   : > { %p401_p6 = scmp.lt.s32.totalorder %s3225_s20, 8  ;;  %416 = sbr.rel (%p4004_p3) target bundleno = 96 (0x60), region = 76  ;;  %417 = vst [vmem:[#allocation2] sm:$0xff] (!%p4004_p3), %v3051_v0  ;;  %418 = vst [vmem:[#allocation3] sm:$0xff] (!%p4004_p3), %v3051_v0 }
  0x5a   : > { %419 = vst [vmem:[#allocation4] sm:$0xff] (!%p4004_p3), %v3051_v0  ;;  %420 = vst [vmem:[#allocation5] sm:$0xff] (!%p4004_p3), %v3051_v0 }
  0x5b   : > { %s402_s17 = scalar_select %p401_p6, %s3225_s20, 8 }
  0x5d   : > { %s2409_s22 = sshll.u32 %s402_s17, 3 }
  0x5e   : > { %s3234_s12 = scalar_lea.vmem %s3929_s0, %s2409_s22  ;;  %s3239_s21 = scalar_lea.vmem %s3930_s1, %s2409_s22 }
  0x60 PF: > { %v421_v1 = vld [vmem:[%s3931_s2] sm:$0xff]  ;;  %vm532_vm0 = vcmask 1043456   ;;  %v422_v2 = vld [vmem:[%s3931_s2 + $0x8] sm:$0xff]  ;;  %v3940_v8 = vmov 0   ;;  %vm528_vm1 = vcmask 64512   ;;  %s2113_s23 = sadd.s32 2, %s3225_s20 }
  0x61   : > { %v495_v3 = vld [vmem:[%s3234_s12] sm:$0xff]  ;;  %v3250_v4 = vcombine.high %v421_v1, %v421_v1  ;;  %v3252_v5 = vcombine.high %v422_v2, %v422_v2  ;;  %v2412_v6 = vcombine.low %v421_v1, %v421_v1  ;;  %v2414_v7 = vcombine.low %v422_v2, %v422_v2  ;;  %577 = vmatprep.mubr.bf16.mxu0 %v3940_v8  ;;  %v424_v10 = vld [vmem:[%s3932_s3 + $0x8] sm:$0xff]  ;;  %s1301_s18 = scalar_select %p401_p6, 1, 0 }
  0x62   : > { %v423_v9 = vld [vmem:[%s3932_s3] sm:$0xff]  ;;  %618 = vmatprep.mubr.bf16.mxu1 %v3940_v8  ;;  %v3264_v13 = vcombine.high %v424_v10, %v424_v10  ;;  %v496_v16 = vpack.c.bf16 %v495_v3, %v495_v3  ;;  %v2422_v17 = vcombine.low %v424_v10, %v424_v10  ;;  %v3296_v21 = vld [vmem:[%s3935_s6 + $0xc] ss:$16 sps:$4 sm:$0xff]   ;;  %v3315_v25 = vld [vmem:[%s3935_s6 + $0x8] ss:$16 sps:$4 sm:$0xff]   ;;  %p2114_p8 = scmp.lt.s32.totalorder %s2113_s23, 8 }
  0x63   : > { %4005 = vst [vmem:[#allocation16_spill] sm:$0xff] %v3250_v4  ;;  %v3262_v11 = vcombine.high %v423_v9, %v423_v9  ;;  %v2420_v12 = vcombine.low %v423_v9, %v423_v9  ;;  %2416 = vmatprep.subr.msk.bf16.mxu0 %vm532_vm0, %v3250_v4  ;;  %2418 = vmatprep.subr.msk.bf16.mxu1 %vm532_vm0, %v3252_v5  ;;  %v3271_v14 = vsel %vm532_vm0, %v2412_v6, 0  ;;  %v3274_v15 = vsel %vm532_vm0, %v2414_v7, 0  ;;  %v3291_v20 = vld [vmem:[%s3935_s6 + $0x4] ss:$16 sps:$4 sm:$0xff]   ;;  %p2530_p13 = scmp.ne.s32.totalorder %s3115_s16, 2 }
  0x64   : > { %4006 = vst [vmem:[#allocation17_spill] sm:$0xff] %v3264_v13  ;;  %546 = vmatpush1.bf16.msra.mxu0 %v3271_v14  ;;  %587 = vmatpush1.bf16.msra.mxu1 %v3274_v15  ;;  %v3286_v19 = vsel %vm532_vm0, %v2422_v17, 0  ;;  %v627_v22 = vld [vmem:[%s3239_s21] sm:$0xff]  ;;  %v3325_v27 = vld [vmem:[%s3935_s6 + $0x2c] ss:$16 sps:$4 sm:$0xff]  }
  0x65   : > { %2424 = vmatprep.subr.msk.bf16.mxu0 %vm532_vm0, %v3262_v11  ;;  %v3281_v18 = vsel %vm532_vm0, %v2420_v12, 0  ;;  %2426 = vmatprep.subr.msk.bf16.mxu1 %vm532_vm0, %v3264_v13  ;;  %v628_v23 = vpack.c.bf16 %v627_v22, %v627_v22  ;;  %v3310_v24 = vld [vmem:[%s3935_s6] ss:$16 sps:$4 sm:$0xff]   ;;  %v3320_v26 = vld [vmem:[%s3935_s6 + $0x24] ss:$16 sps:$4 sm:$0xff]  }
  0x66   : > { %v3334_v28 = vld [vmem:[%s3935_s6 + $0x20] ss:$16 sps:$4 sm:$0xff]   ;;  %v3339_v29 = vld [vmem:[%s3935_s6 + $0x28] ss:$16 sps:$4 sm:$0xff]   ;;  %v3346_v30 = vld [vmem:[%s3935_s6 + $0x44] ss:$16 sps:$4 sm:$0xff]  }
  0x67   : > { %2417 = vmatmul.mubr.msk.bf16.vlgmr.msra.gmra.mrb[0].mxu0 %vm528_vm1, %v496_v16  ;;  %2419 = vmatmul.mubr.msk.bf16.vlgmr.msra.gmra.mrb[0].mxu1 %vm528_vm1, %v496_v16  ;;  %v3351_v31 = vld [vmem:[%s3935_s6 + $0x4c] ss:$16 sps:$4 sm:$0xff]   ;;  %v3360_v32 = vld [vmem:[%s3935_s6 + $0x40] ss:$16 sps:$4 sm:$0xff]   ;;  %v3365_v33 = vld [vmem:[%s3935_s6 + $0x48] ss:$16 sps:$4 sm:$0xff]  }
  0x68   : > { %676 = vmatpush1.bf16.msra.mxu0 %v3281_v18  ;;  %717 = vmatpush1.bf16.msra.mxu1 %v3286_v19  ;;  %v3372_v34 = vld [vmem:[%s3935_s6 + $0x64] ss:$16 sps:$4 sm:$0xff]   ;;  %v3377_v35 = vld [vmem:[%s3935_s6 + $0x6c] ss:$16 sps:$4 sm:$0xff]   ;;  %v3382_v36 = vld [vmem:[%s3935_s6 + $0x60] ss:$16 sps:$4 sm:$0xff]  }
  0x69   : > { %707 = vmatprep.mubr.bf16.mxu0 %v3940_v8  ;;  %748 = vmatprep.mubr.bf16.mxu1 %v3940_v8  ;;  %v3389_v37 = vld [vmem:[%s3935_s6 + $0x68] ss:$16 sps:$4 sm:$0xff]   ;;  %v3394_v38 = vld [vmem:[%s3935_s6 + $0x84] ss:$16 sps:$4 sm:$0xff]   ;;  %v3401_v39 = vld [vmem:[%s3935_s6 + $0x8c] ss:$16 sps:$4 sm:$0xff]  }
  0x6a   : > { %918 = vmatprep.subr.bf16.mxu0 %v3291_v20  ;;  %959 = vmatprep.subr.bf16.mxu1 %v3296_v21  ;;  %4007 = vst [vmem:[#allocation18_spill] sm:$0xff] %v3389_v37  ;;  %4008 = vst [vmem:[#allocation19_spill] sm:$0xff] %v3394_v38  ;;  %v3406_v40 = vld [vmem:[%s3935_s6 + $0x80] ss:$16 sps:$4 sm:$0xff]   ;;  %v3413_v41 = vld [vmem:[%s3935_s6 + $0x88] ss:$16 sps:$4 sm:$0xff]  }
  0x6b   : > { %4009 = vst [vmem:[#allocation20_spill] sm:$0xff] %v3401_v39  ;;  %4010 = vst [vmem:[#allocation21_spill] sm:$0xff] %v3406_v40  ;;  %v3418_v42 = vld [vmem:[%s3935_s6 + $0xa4] ss:$16 sps:$4 sm:$0xff]   ;;  %v3425_v43 = vld [vmem:[%s3935_s6 + $0xac] ss:$16 sps:$4 sm:$0xff]  }
  0x6c   : > { %4011 = vst [vmem:[#allocation22_spill] sm:$0xff] %v3413_v41  ;;  %4012 = vst [vmem:[#allocation23_spill] sm:$0xff] %v3418_v42  ;;  %v3430_v44 = vld [vmem:[%s3935_s6 + $0xa0] ss:$16 sps:$4 sm:$0xff]   ;;  %v3437_v45 = vld [vmem:[%s3935_s6 + $0xa8] ss:$16 sps:$4 sm:$0xff]  }
  0x6d   : > { %4013 = vst [vmem:[#allocation24_spill] sm:$0xff] %v3425_v43  ;;  %4014 = vst [vmem:[#allocation25_spill] sm:$0xff] %v3430_v44  ;;  %v3442_v46 = vld [vmem:[%s3935_s6 + $0xc4] ss:$16 sps:$4 sm:$0xff]   ;;  %v3449_v47 = vld [vmem:[%s3935_s6 + $0xcc] ss:$16 sps:$4 sm:$0xff]  }
  0x6e   : > { %4015 = vst [vmem:[#allocation26_spill] sm:$0xff] %v3437_v45  ;;  %4016 = vst [vmem:[#allocation27_spill] sm:$0xff] %v3442_v46  ;;  %v3454_v48 = vld [vmem:[%s3935_s6 + $0xc0] ss:$16 sps:$4 sm:$0xff]   ;;  %v3461_v49 = vld [vmem:[%s3935_s6 + $0xc8] ss:$16 sps:$4 sm:$0xff]  }
  0x6f   : > { %2425 = vmatmul.mubr.msk.bf16.vlgmr.msra.gmra.mrb[4].mxu0 %vm528_vm1, %v628_v23  ;;  %2427 = vmatmul.mubr.msk.bf16.vlgmr.msra.gmra.mrb[4].mxu1 %vm528_vm1, %v628_v23  ;;  %4017 = vst [vmem:[#allocation28_spill] sm:$0xff] %v3449_v47  ;;  %4018 = vst [vmem:[#allocation29_spill] sm:$0xff] %v3454_v48  ;;  %v3466_v50 = vld [vmem:[%s3935_s6 + $0xe4] ss:$16 sps:$4 sm:$0xff]   ;;  %v3473_v51 = vld [vmem:[%s3935_s6 + $0xec] ss:$16 sps:$4 sm:$0xff]  }
  0x70   : > { %919 = vmatpush1.bf16.msra.mxu0 %v3310_v24  ;;  %960 = vmatpush1.bf16.msra.mxu1 %v3315_v25  ;;  %4019 = vst [vmem:[#allocation30_spill] sm:$0xff] %v3461_v49  ;;  %4020 = vst [vmem:[#allocation31_spill] sm:$0xff] %v3466_v50  ;;  %v3478_v52 = vld [vmem:[%s3935_s6 + $0xe0] ss:$16 sps:$4 sm:$0xff]   ;;  %v3483_v53 = vld [vmem:[%s3935_s6 + $0xe8] ss:$16 sps:$4 sm:$0xff]  }
  0x71   : > { %920 = vmatprep.subr.bf16.mxu0 %v3320_v26  ;;  %961 = vmatprep.subr.bf16.mxu1 %v3325_v27  ;;  %4021 = vst [vmem:[#allocation32_spill] sm:$0xff] %v3473_v51  ;;  %4022 = vst [vmem:[#allocation33_spill] sm:$0xff] %v3478_v52  ;;  %v3487_v54 = vld [vmem:[#allocation2] sm:$0xff]  ;;  %v3489_v55 = vld [vmem:[#allocation9 + $0x4] ss:$16 sps:$4 sm:$0xff]  }
  0x72   : > { %950 = vmatprep.mubr.bf16.mxu0 %v3940_v8  ;;  %991 = vmatprep.mubr.bf16.mxu1 %v3940_v8  ;;  %4023 = vst [vmem:[#allocation34_spill] sm:$0xff] %v3483_v53  ;;  %4024 = vst [vmem:[#allocation35_spill] sm:$0xff] %v3489_v55  ;;  %v3493_v56 = vld [vmem:[#allocation9 + $0xc] ss:$16 sps:$4 sm:$0xff]   ;;  %v757_v57 = vpack.c.bf16 %v3487_v54, %v3487_v54  ;;  %v3499_v58 = vld [vmem:[#allocation9] ss:$16 sps:$4 sm:$0xff]  }
  0x73   : > { %4025 = vst [vmem:[#allocation36_spill] sm:$0xff] %v3493_v56  ;;  %v3501_v59 = vld [vmem:[#allocation9 + $0x8] ss:$16 sps:$4 sm:$0xff]   ;;  %v3505_v60 = vld [vmem:[#allocation9 + $0x24] ss:$16 sps:$4 sm:$0xff]  }
  0x74   : > { %921 = vmatpush1.bf16.msra.mxu0 %v3334_v28  ;;  %962 = vmatpush1.bf16.msra.mxu1 %v3339_v29  ;;  %v3507_v61 = vld [vmem:[#allocation9 + $0x2c] ss:$16 sps:$4 sm:$0xff]   ;;  %v3511_v62 = vld [vmem:[#allocation9 + $0x20] ss:$16 sps:$4 sm:$0xff]   ;;  %v3513_v63 = vld [vmem:[#allocation9 + $0x28] ss:$16 sps:$4 sm:$0xff]  }
  0x75   : > { %922 = vmatprep.subr.bf16.mxu0 %v3346_v30  ;;  %963 = vmatprep.subr.bf16.mxu1 %v3351_v31  ;;  %v3517_v0 = vld [vmem:[#allocation9 + $0x44] ss:$16 sps:$4 sm:$0xff]   ;;  %v3519_v1 = vld [vmem:[#allocation9 + $0x4c] ss:$16 sps:$4 sm:$0xff]   ;;  %v3525_v2 = vld [vmem:[#allocation9 + $0x40] ss:$16 sps:$4 sm:$0xff]  }
  0x76   : > { %v3527_v3 = vld [vmem:[#allocation9 + $0x48] ss:$16 sps:$4 sm:$0xff]   ;;  %v3531_v6 = vld [vmem:[#allocation9 + $0x64] ss:$16 sps:$4 sm:$0xff]   ;;  %v3533_v7 = vld [vmem:[#allocation9 + $0x6c] ss:$16 sps:$4 sm:$0xff]  }
  0x77   : > { %v3537_v9 = vld [vmem:[#allocation9 + $0x60] ss:$16 sps:$4 sm:$0xff]   ;;  %v3539_v10 = vld [vmem:[#allocation9 + $0x68] ss:$16 sps:$4 sm:$0xff]   ;;  %v3543_v12 = vld [vmem:[#allocation9 + $0x84] ss:$16 sps:$4 sm:$0xff]  }
  0x78   : > { %923 = vmatpush1.bf16.msra.mxu0 %v3360_v32  ;;  %964 = vmatpush1.bf16.msra.mxu1 %v3365_v33  ;;  %4026 = vst [vmem:[#allocation37_spill] sm:$0xff] %v3537_v9  ;;  %4027 = vst [vmem:[#allocation38_spill] sm:$0xff] %v3539_v10  ;;  %v3545_v16 = vld [vmem:[#allocation9 + $0x8c] ss:$16 sps:$4 sm:$0xff]   ;;  %v3549_v17 = vld [vmem:[#allocation9 + $0x80] ss:$16 sps:$4 sm:$0xff]  }
  0x79   : > { %924 = vmatprep.subr.bf16.mxu0 %v3372_v34  ;;  %965 = vmatprep.subr.bf16.mxu1 %v3377_v35  ;;  %4028 = vst [vmem:[#allocation39_spill] sm:$0xff] %v3543_v12  ;;  %4029 = vst [vmem:[#allocation40_spill] sm:$0xff] %v3545_v16  ;;  %v3551_v22 = vld [vmem:[#allocation9 + $0x88] ss:$16 sps:$4 sm:$0xff]   ;;  %v3555_v23 = vld [vmem:[#allocation9 + $0xa4] ss:$16 sps:$4 sm:$0xff]  }
  0x7a   : > { %4030 = vst [vmem:[#allocation41_spill] sm:$0xff] %v3549_v17  ;;  %4031 = vst [vmem:[#allocation42_spill] sm:$0xff] %v3551_v22  ;;  %s2115_s24 = scalar_select %p2114_p8, 1, 0 }
  0x7b   : > { %4032 = vst [vmem:[#allocation43_spill] sm:$0xff] %v3555_v23 }
  0x7c   : > { %925 = vmatpush1.bf16.msra.mxu0 %v3382_v36  ;;  %966 = vmatpush1.bf16.msra.mxu1 %v3389_v37 }
  0x7d   : > { %926 = vmatprep.subr.bf16.mxu0 %v3394_v38  ;;  %967 = vmatprep.subr.bf16.mxu1 %v3401_v39 }
  0x80   : > { %927 = vmatpush1.bf16.msra.mxu0 %v3406_v40  ;;  %968 = vmatpush1.bf16.msra.mxu1 %v3413_v41 }
  0x81   : > { %928 = vmatprep.subr.bf16.mxu0 %v3418_v42  ;;  %969 = vmatprep.subr.bf16.mxu1 %v3425_v43 }
  0x84   : > { %929 = vmatpush1.bf16.msra.mxu0 %v3430_v44  ;;  %970 = vmatpush1.bf16.msra.mxu1 %v3437_v45 }
  0x85   : > { %930 = vmatprep.subr.bf16.mxu0 %v3442_v46  ;;  %971 = vmatprep.subr.bf16.mxu1 %v3449_v47 }
  0x88   : > { %931 = vmatpush1.bf16.msra.mxu0 %v3454_v48  ;;  %972 = vmatpush1.bf16.msra.mxu1 %v3461_v49 }
  0x89   : > { %932 = vmatprep.subr.bf16.mxu0 %v3466_v50  ;;  %973 = vmatprep.subr.bf16.mxu1 %v3473_v51 }
  0x8c   : > { %933 = vmatpush1.bf16.msra.mxu0 %v3478_v52  ;;  %974 = vmatpush1.bf16.msra.mxu1 %v3483_v53 }
  0x8d   : > { %1161 = vmatprep.subr.bf16.mxu0 %v3489_v55  ;;  %1202 = vmatprep.subr.bf16.mxu1 %v3493_v56 }
  0x8f   : > { %951 = vmatmul.mubr.bf16.vlgmr.msra.gmra.mrb[0].mxu0 %v757_v57  ;;  %992 = vmatmul.mubr.bf16.vlgmr.msra.gmra.mrb[0].mxu1 %v757_v57  ;;  %v3557_v57 = vld [vmem:[#allocation9 + $0xac] ss:$16 sps:$4 sm:$0xff]  }
  0x90   : > { %1162 = vmatpush1.bf16.msra.mxu0 %v3499_v58  ;;  %1203 = vmatpush1.bf16.msra.mxu1 %v3501_v59  ;;  %4033 = vst [vmem:[#allocation44_spill] sm:$0xff] %v3557_v57 }
  0x91   : > { %1163 = vmatprep.subr.bf16.mxu0 %v3505_v60  ;;  %1204 = vmatprep.subr.bf16.mxu1 %v3507_v61 }
  0x92   : > { %1193 = vmatprep.mubr.bf16.mxu0 %v3940_v8  ;;  %1234 = vmatprep.mubr.bf16.mxu1 %v3940_v8  ;;  %v3561_v8 = vld [vmem:[#allocation9 + $0xa0] ss:$16 sps:$4 sm:$0xff]  }
  0x93   : > { %4034 = vst [vmem:[#allocation45_spill] sm:$0xff] %v3561_v8 }
  0x94   : > { %1164 = vmatpush1.bf16.msra.mxu0 %v3511_v62  ;;  %1205 = vmatpush1.bf16.msra.mxu1 %v3513_v63 }
  0x95   : > { %1165 = vmatprep.subr.bf16.mxu0 %v3517_v0  ;;  %1206 = vmatprep.subr.bf16.mxu1 %v3519_v1 }
  0x98   : > { %1166 = vmatpush1.bf16.msra.mxu0 %v3525_v2  ;;  %1207 = vmatpush1.bf16.msra.mxu1 %v3527_v3 }
  0x99   : > { %1167 = vmatprep.subr.bf16.mxu0 %v3531_v6  ;;  %1208 = vmatprep.subr.bf16.mxu1 %v3533_v7 }
  0x9c   : > { %1168 = vmatpush1.bf16.msra.mxu0 %v3537_v9  ;;  %1209 = vmatpush1.bf16.msra.mxu1 %v3539_v10  ;;  %v3563_v9 = vld [vmem:[#allocation9 + $0xa8] ss:$16 sps:$4 sm:$0xff]   ;;  %v3567_v10 = vld [vmem:[#allocation9 + $0xc4] ss:$16 sps:$4 sm:$0xff]  }
  0x9d   : > { %1169 = vmatprep.subr.bf16.mxu0 %v3543_v12  ;;  %1210 = vmatprep.subr.bf16.mxu1 %v3545_v16  ;;  %4035 = vst [vmem:[#allocation46_spill] sm:$0xff] %v3563_v9  ;;  %v3569_v12 = vld [vmem:[#allocation9 + $0xcc] ss:$16 sps:$4 sm:$0xff]   ;;  %v3573_v16 = vld [vmem:[#allocation9 + $0xc0] ss:$16 sps:$4 sm:$0xff]  }
  0x9e   : > { %4036 = vst [vmem:[#allocation47_spill] sm:$0xff] %v3569_v12 }
  0xa0   : > { %1170 = vmatpush1.bf16.msra.mxu0 %v3549_v17  ;;  %1211 = vmatpush1.bf16.msra.mxu1 %v3551_v22  ;;  %v3575_v17 = vld [vmem:[#allocation9 + $0xc8] ss:$16 sps:$4 sm:$0xff]   ;;  %v3579_v22 = vld [vmem:[#allocation9 + $0xe4] ss:$16 sps:$4 sm:$0xff]  }
  0xa1   : > { %1171 = vmatprep.subr.bf16.mxu0 %v3555_v23  ;;  %1212 = vmatprep.subr.bf16.mxu1 %v3557_v57  ;;  %4037 = vst [vmem:[#allocation48_spill] sm:$0xff] %v3575_v17  ;;  %v3581_v23 = vld [vmem:[#allocation9 + $0xec] ss:$16 sps:$4 sm:$0xff]   ;;  %v3585_v57 = vld [vmem:[#allocation9 + $0xe0] ss:$16 sps:$4 sm:$0xff]  }
  0xa2   : > { %4038 = vst [vmem:[#allocation49_spill] sm:$0xff] %v3581_v23 }
  0xa4   : > { %1172 = vmatpush1.bf16.msra.mxu0 %v3561_v8  ;;  %1213 = vmatpush1.bf16.msra.mxu1 %v3563_v9  ;;  %v3587_v8 = vld [vmem:[#allocation9 + $0xe8] ss:$16 sps:$4 sm:$0xff]   ;;  %v3589_v9 = vld [vmem:[#allocation4] sm:$0xff] }
  0xa5   : > { %1173 = vmatprep.subr.bf16.mxu0 %v3567_v10  ;;  %1214 = vmatprep.subr.bf16.mxu1 %v3569_v12  ;;  %4039 = vst [vmem:[#allocation50_spill] sm:$0xff] %v3589_v9  ;;  %v1000_v12 = vpack.c.bf16 %v3589_v9, %v3589_v9 }
  0xa8   : > { %1174 = vmatpush1.bf16.msra.mxu0 %v3573_v16  ;;  %1215 = vmatpush1.bf16.msra.mxu1 %v3575_v17 }
  0xa9   : > { %1175 = vmatprep.subr.bf16.mxu0 %v3579_v22  ;;  %1216 = vmatprep.subr.bf16.mxu1 %v3581_v23  ;;  %v4040_v23 = vmov 0  }
  0xac   : > { %1176 = vmatpush1.bf16.msra.mxu0 %v3585_v57  ;;  %1217 = vmatpush1.bf16.msra.mxu1 %v3587_v8 }
  0xad   : > { %2499 = vmatprep.subr.msk.bf16.mxu0 %vm532_vm0, %v3250_v4  ;;  %2501 = vmatprep.subr.msk.bf16.mxu1 %vm532_vm0, %v3252_v5  ;;  %v2498_v4 = vld [vmem:[%s3234_s12 + $0x8] sm:$0xff] }
  0xae   : > { %v1310_v9 = vpack.c.bf16 %v2498_v4, %v2498_v4  ;;  %v498_v4 = vlaneseq }
  0xaf   : > { %1194 = vmatmul.mubr.bf16.vlgmr.msra.gmra.mrb[4].mxu0 %v1000_v12  ;;  %1235 = vmatmul.mubr.bf16.vlgmr.msra.gmra.mrb[4].mxu1 %v1000_v12  ;;  %v2503_v12 = vld [vmem:[%s3239_s21 + $0x8] sm:$0xff] }
  0xb0   : > { %1315 = vmatpush1.bf16.msra.mxu0 %v3271_v14  ;;  %1356 = vmatpush1.bf16.msra.mxu1 %v3274_v15 }
  0xb1   : > { %1346 = vmatprep.mubr.bf16.mxu0 %v4040_v23  ;;  %1387 = vmatprep.mubr.bf16.mxu1 %v4040_v23 }
  0xb2   : > { %2504 = vmatprep.subr.msk.bf16.mxu0 %vm532_vm0, %v3262_v11  ;;  %2506 = vmatprep.subr.msk.bf16.mxu1 %vm532_vm0, %v3264_v13  ;;  %v1398_v13 = vpack.c.bf16 %v2503_v12, %v2503_v12  ;;  %v425_v12 = vld [vmem:[%s3933_s4] sm:$0xf] }
  0xb7   : > { %2500 = vmatmul.mubr.msk.bf16.vlgmr.msra.gmra.mrb[8].mxu0 %vm528_vm1, %v1310_v9  ;;  %2502 = vmatmul.mubr.msk.bf16.vlgmr.msra.gmra.mrb[8].mxu1 %vm528_vm1, %v1310_v9 }
  0xb8   : > { %1403 = vmatpush1.bf16.msra.mxu0 %v3281_v18  ;;  %1444 = vmatpush1.bf16.msra.mxu1 %v3286_v19 }
  0xb9   : > { %1434 = vmatprep.mubr.bf16.mxu0 %v4040_v23  ;;  %1475 = vmatprep.mubr.bf16.mxu1 %v4040_v23 }
  0xba   : > { %1485 = vmatprep.subr.bf16.mxu0 %v3291_v20  ;;  %1526 = vmatprep.subr.bf16.mxu1 %v3296_v21 }
  0xbf   : > { %2505 = vmatmul.mubr.msk.bf16.vlgmr.msra.gmra.mrb[12].mxu0 %vm528_vm1, %v1398_v13  ;;  %2507 = vmatmul.mubr.msk.bf16.vlgmr.msra.gmra.mrb[12].mxu1 %vm528_vm1, %v1398_v13  ;;  %v3655_v13 = vshrl.u32 %v498_v4, 7 }
  0xc0   : > { %1486 = vmatpush1.bf16.msra.mxu0 %v3310_v24  ;;  %1527 = vmatpush1.bf16.msra.mxu1 %v3315_v25 }
  0xc1   : > { %1487 = vmatprep.subr.bf16.mxu0 %v3320_v26  ;;  %1528 = vmatprep.subr.bf16.mxu1 %v3325_v27  ;;  %v500_v9 = vsub.s32 0, %v3655_v13 }
  0xc2   : > { %1517 = vmatprep.mubr.bf16.mxu0 %v4040_v23  ;;  %1558 = vmatprep.mubr.bf16.mxu1 %v4040_v23 }
  0xc4   : > { %1488 = vmatpush1.bf16.msra.mxu0 %v3334_v28  ;;  %1529 = vmatpush1.bf16.msra.mxu1 %v3339_v29 }
  0xc5   : > { %1489 = vmatprep.subr.bf16.mxu0 %v3346_v30  ;;  %1530 = vmatprep.subr.bf16.mxu1 %v3351_v31 }
  0xc8   : > { %1490 = vmatpush1.bf16.msra.mxu0 %v3360_v32  ;;  %1531 = vmatpush1.bf16.msra.mxu1 %v3365_v33 }
  0xc9   : > { %1491 = vmatprep.subr.bf16.mxu0 %v3372_v34  ;;  %1532 = vmatprep.subr.bf16.mxu1 %v3377_v35 }
  0xcc   : > { %1492 = vmatpush1.bf16.msra.mxu0 %v3382_v36  ;;  %1533 = vmatpush1.bf16.msra.mxu1 %v3389_v37 }
  0xcd   : > { %1493 = vmatprep.subr.bf16.mxu0 %v3394_v38  ;;  %1534 = vmatprep.subr.bf16.mxu1 %v3401_v39  ;;  %v508_v39 = vsub.s32 2, %v3655_v13 }
  0xd0   : > { %1494 = vmatpush1.bf16.msra.mxu0 %v3406_v40  ;;  %1535 = vmatpush1.bf16.msra.mxu1 %v3413_v41 }
  0xd1   : > { %1495 = vmatprep.subr.bf16.mxu0 %v3418_v42  ;;  %1536 = vmatprep.subr.bf16.mxu1 %v3425_v43 }
  0xd4   : > { %1496 = vmatpush1.bf16.msra.mxu0 %v3430_v44  ;;  %1537 = vmatpush1.bf16.msra.mxu1 %v3437_v45 }
  0xd5   : > { %1497 = vmatprep.subr.bf16.mxu0 %v3442_v46  ;;  %1538 = vmatprep.subr.bf16.mxu1 %v3449_v47 }
  0xd8   : > { %1498 = vmatpush1.bf16.msra.mxu0 %v3454_v48  ;;  %1539 = vmatpush1.bf16.msra.mxu1 %v3461_v49 }
  0xd9   : > { %1499 = vmatprep.subr.bf16.mxu0 %v3466_v50  ;;  %1540 = vmatprep.subr.bf16.mxu1 %v3473_v51  ;;  %v504_v50 = vsub.s32 1, %v3655_v13  ;;  %v3662_v51 = vrot.slane %v425_v12, %v500_v9 }
  0xdb   : > { %4041 = vst [vmem:[#allocation51_spill] sm:$0xff] %v3662_v51 }
  0xdc   : > { %1500 = vmatpush1.bf16.msra.mxu0 %v3478_v52  ;;  %1541 = vmatpush1.bf16.msra.mxu1 %v3483_v53  ;;  %v3664_v52 = vrot.slane %v425_v12, %v504_v50 }
  0xdd   : > { %1568 = vmatprep.subr.bf16.mxu0 %v3489_v55  ;;  %1609 = vmatprep.subr.bf16.mxu1 %v3493_v56  ;;  %v512_v55 = vsub.s32 3, %v3655_v13  ;;  %v1302_v13 = vstv %s1301_s18 }
  0xde   : > { %4042 = vst [vmem:[#allocation52_spill] sm:$0xff] %v3664_v52  ;;  %vm3682_vm2 = vcmp.eq.s32.totalorder %v1302_v13, 1 }
  0xdf   : > { %v3669_v40 = vrot.slane %v425_v12, %v512_v55 }
  0xe1   : > { %4043 = vst [vmem:[#allocation53_spill] sm:$0xff] %v3669_v40 }
 0x162   : > { %v952_v53 = vpop.f32.mrb[0].mxu0  ;;  %v993_v49 = vpop.f32.mrb[0].mxu1 }
 0x163   : > { %v2574_v56 = vadd.f32 %v952_v53, %v3662_v51  ;;  %v954_v4 = vpop.f32.mrb[1].mxu0  ;;  %v995_v48 = vpop.f32.mrb[1].mxu1  ;;  %v3673_v53 = vrot.slane %v425_v12, %v508_v39 }
 0x164   : > { %v2575_v47 = vadd.f32 %v954_v4, %v3664_v52  ;;  %v956_v46 = vpop.f32.mrb[2].mxu0  ;;  %v997_v45 = vpop.f32.mrb[2].mxu1  ;;  %v2577_v38 = vadd.f32 %v995_v48, %v3669_v40 }
 0x165   : > { %v2492_v44 = vmul.f32 -1.442695, %v2574_v56  ;;  %v957_v43 = vpop.f32.mrb[3].mxu0  ;;  %v998_v42 = vpop.f32.mrb[3].mxu1  ;;  %4044 = vst [vmem:[#allocation54_spill] sm:$0xff] %v3673_v53  ;;  %v2576_v4 = vadd.f32 %v993_v49, %v3673_v53 }
 0x166   : > { %v2493_v41 = vmul.f32 -1.442695, %v2575_v47  ;;  %v2494_v51 = vmul.f32 -1.442695, %v2577_v38  ;;  %v492_v47 = vld [vmem:[#allocation3] sm:$0xff] }
 0x167   : > { %2802 = vpow2.f32 %v2492_v44  ;;  %v426_v44 = vld [vmem:[#allocation6] sm:$0xf] }
 0x168   : > { %2804 = vpow2.f32 %v2493_v41  ;;  %v3678_v49 = vrot.slane %v426_v44, %v500_v9 }
 0x169   : > { %2806 = vpow2.f32 %v2494_v51  ;;  %v4063_v51 = vld [vmem:[#allocation17_spill] sm:$0xff] }
 0x16a   : > { %2808 = vtanh.f32 %v2576_v4  ;;  %4045 = vst [vmem:[#allocation55_spill] sm:$0xff] %v3678_v49 }
 0x171   : > { %v2803_v46 = vpop.eup %2802 }
 0x172   : > { %v2805_v45 = vpop.eup %2804  ;;  %v1250_v56 = vadd.f32 1.0, %v2803_v46  ;;  %v3680_v46 = vrot.slane %v426_v44, %v504_v50 }
 0x173   : > { %v1256_v42 = vadd.f32 1.0, %v2805_v45  ;;  %v2807_v43 = vpop.eup %2806 }
 0x174   : > { %2810 = vrcp.f32 %v1250_v56  ;;  %v2809_v41 = vpop.eup %2808  ;;  %v1263_v40 = vadd.f32 1.0, %v2807_v43  ;;  %4046 = vst [vmem:[#allocation56_spill] sm:$0xff] %v3680_v46 }
 0x175   : > { %2812 = vrcp.f32 %v1256_v42 }
 0x176   : > { %2814 = vrcp.f32 %v1263_v40 }
 0x17e   : > { %v2811_v48 = vpop.eup %2810 }
 0x17f   : > { %v2813_v12 = vpop.eup %2812  ;;  %v1267_v38 = vmul.f32 %v2811_v48, %v2809_v41 }
 0x180   : > { %v1266_v53 = vmul.f32 %v2813_v12, %v492_v47 }
 0x182   : > { %v1268_v4 = vadd.f32 %v1267_v38, %v1266_v53  ;;  %v1195_v45 = vpop.f32.mrb[4].mxu0  ;;  %v1236_v56 = vpop.f32.mrb[4].mxu1  ;;  %v3692_v38 = vrot.slane %v426_v44, %v512_v55 }
 0x183   : > { %v2578_v42 = vadd.f32 %v1195_v45, %v3678_v49  ;;  %v1197_v52 = vpop.f32.mrb[5].mxu0  ;;  %v1238_v37 = vpop.f32.mrb[5].mxu1  ;;  %v3695_v45 = vrot.slane %v426_v44, %v508_v39 }
 0x184   : > { %2816 = vtanh.f32 %v1268_v4  ;;  %v2579_v43 = vadd.f32 %v1197_v52, %v3680_v46  ;;  %v1199_v9 = vpop.f32.mrb[6].mxu0  ;;  %v1240_v41 = vpop.f32.mrb[6].mxu1  ;;  %v3690_v50 = vsel %vm3682_vm2, %v1268_v4, %v492_v47  ;;  %v2581_v40 = vadd.f32 %v1238_v37, %v3692_v38 }
 0x185   : > { %v2495_v48 = vmul.f32 -1.442695, %v2578_v42  ;;  %v1200_v13 = vpop.f32.mrb[7].mxu0  ;;  %v1241_v12 = vpop.f32.mrb[7].mxu1  ;;  %v2580_v41 = vadd.f32 %v1236_v56, %v3695_v45 }
 0x186   : > { %v2496_v53 = vmul.f32 -1.442695, %v2579_v43  ;;  %v2815_v49 = vpop.eup %2814  ;;  %v2497_v9 = vmul.f32 -1.442695, %v2581_v40  ;;  %v4049_v12 = vld [vmem:[#allocation37_spill] sm:$0xff] }
 0x187   : > { %2818 = vpow2.f32 %v2495_v48 }
 0x188   : > { %2820 = vpow2.f32 %v2496_v53  ;;  %v4050_v53 = vld [vmem:[#allocation38_spill] sm:$0xff] }
 0x189   : > { %2822 = vpow2.f32 %v2497_v9  ;;  %v4052_v9 = vld [vmem:[#allocation40_spill] sm:$0xff] }
 0x18a   : > { %2824 = vtanh.f32 %v2580_v41 }
 0x18e   : > { %v2817_v52 = vpop.eup %2816 }
 0x18f   : > { %v1270_v46 = vmul.f32 %v2817_v52, %v2815_v49  ;;  %v494_v49 = vld [vmem:[#allocation5] sm:$0xff]  ;;  %v4051_v52 = vld [vmem:[#allocation39_spill] sm:$0xff] }
 0x191   : > { %v2819_v47 = vpop.eup %2818  ;;  %v3701_v4 = vsel %vm3682_vm2, %v1270_v46, %v3487_v54 }
 0x192   : > { %v2821_v55 = vpop.eup %2820  ;;  %v1278_v42 = vadd.f32 1.0, %v2819_v47  ;;  %v1484_v37 = vpack.c.bf16 %v3701_v4, %v3701_v4  ;;  %v4053_v47 = vld [vmem:[#allocation41_spill] sm:$0xff] }
 0x193   : > { %v1284_v39 = vadd.f32 1.0, %v2821_v55  ;;  %v2823_v54 = vpop.eup %2822  ;;  %v4054_v55 = vld [vmem:[#allocation42_spill] sm:$0xff] }
 0x194   : > { %2826 = vrcp.f32 %v1278_v42  ;;  %1518 = vmatmul.mubr.bf16.vlgmr.msra.gmra.mrb[8].mxu0 %v1484_v37  ;;  %1559 = vmatmul.mubr.bf16.vlgmr.msra.gmra.mrb[8].mxu1 %v1484_v37  ;;  %v2825_v44 = vpop.eup %2824  ;;  %v1291_v48 = vadd.f32 1.0, %v2823_v54  ;;  %v4055_v42 = vld [vmem:[#allocation43_spill] sm:$0xff]  ;;  %v4056_v37 = vld [vmem:[#allocation44_spill] sm:$0xff]  ;;  %v4058_v54 = vld [vmem:[#allocation46_spill] sm:$0xff] }
 0x195   : > { %2828 = vrcp.f32 %v1284_v39  ;;  %1569 = vmatpush1.bf16.msra.mxu0 %v3499_v58  ;;  %1610 = vmatpush1.bf16.msra.mxu1 %v3501_v59  ;;  %v4057_v39 = vld [vmem:[#allocation45_spill] sm:$0xff] }
 0x196   : > { %1570 = vmatprep.subr.bf16.mxu0 %v3505_v60  ;;  %1611 = vmatprep.subr.bf16.mxu1 %v3507_v61  ;;  %2830 = vrcp.f32 %v1291_v48  ;;  %v4061_v48 = vld [vmem:[#allocation50_spill] sm:$0xff] }
 0x197   : > { %1600 = vmatprep.mubr.bf16.mxu0 %v4040_v23  ;;  %1641 = vmatprep.mubr.bf16.mxu1 %v4040_v23 }
 0x199   : > { %1571 = vmatpush1.bf16.msra.mxu0 %v3511_v62  ;;  %1612 = vmatpush1.bf16.msra.mxu1 %v3513_v63 }
 0x19a   : > { %1572 = vmatprep.subr.bf16.mxu0 %v3517_v0  ;;  %1613 = vmatprep.subr.bf16.mxu1 %v3519_v1 }
 0x19d   : > { %1573 = vmatpush1.bf16.msra.mxu0 %v3525_v2  ;;  %1614 = vmatpush1.bf16.msra.mxu1 %v3527_v3 }
 0x19e   : > { %v2827_v46 = vpop.eup %2826  ;;  %1574 = vmatprep.subr.bf16.mxu0 %v3531_v6  ;;  %1615 = vmatprep.subr.bf16.mxu1 %v3533_v7 }
 0x19f   : > { %v2829_v56 = vpop.eup %2828  ;;  %v1295_v43 = vmul.f32 %v2827_v46, %v2825_v44  ;;  %v4059_v44 = vld [vmem:[#allocation47_spill] sm:$0xff] }
 0x1a0   : > { %v1294_v13 = vmul.f32 %v2829_v56, %v494_v49  ;;  %v2831_v46 = vpop.eup %2830  ;;  %v4060_v56 = vld [vmem:[#allocation49_spill] sm:$0xff] }
 0x1a1   : > { %1575 = vmatpush1.bf16.msra.mxu0 %v4049_v12  ;;  %1616 = vmatpush1.bf16.msra.mxu1 %v4050_v53 }
 0x1a2   : > { %v1296_v40 = vadd.f32 %v1295_v43, %v1294_v13  ;;  %1576 = vmatprep.subr.bf16.mxu0 %v4051_v52  ;;  %1617 = vmatprep.subr.bf16.mxu1 %v4052_v9 }
 0x1a4   : > { %2832 = vtanh.f32 %v1296_v40  ;;  %v3725_v41 = vsel %vm3682_vm2, %v1296_v40, %v494_v49 }
 0x1a5   : > { %1577 = vmatpush1.bf16.msra.mxu0 %v4053_v47  ;;  %1618 = vmatpush1.bf16.msra.mxu1 %v4054_v55 }
 0x1a6   : > { %1578 = vmatprep.subr.bf16.mxu0 %v4055_v42  ;;  %1619 = vmatprep.subr.bf16.mxu1 %v4056_v37 }
 0x1a9   : > { %1579 = vmatpush1.bf16.msra.mxu0 %v4057_v39  ;;  %1620 = vmatpush1.bf16.msra.mxu1 %v4058_v54 }
 0x1aa   : > { %1580 = vmatprep.subr.bf16.mxu0 %v3567_v10  ;;  %1621 = vmatprep.subr.bf16.mxu1 %v4059_v44 }
 0x1ad   : > { %1581 = vmatpush1.bf16.msra.mxu0 %v3573_v16  ;;  %1622 = vmatpush1.bf16.msra.mxu1 %v3575_v17  ;;  %v4062_v17 = vld [vmem:[#allocation16_spill] sm:$0xff] }
 0x1ae   : > { %v2833_v49 = vpop.eup %2832  ;;  %1582 = vmatprep.subr.bf16.mxu0 %v3579_v22  ;;  %1623 = vmatprep.subr.bf16.mxu1 %v4060_v56 }
 0x1af   : > { %v1298_v43 = vmul.f32 %v2833_v49, %v2831_v46 }
 0x1b1   : > { %1583 = vmatpush1.bf16.msra.mxu0 %v3585_v57  ;;  %1624 = vmatpush1.bf16.msra.mxu1 %v3587_v8  ;;  %v3744_v13 = vsel %vm3682_vm2, %v1298_v43, %v4061_v48  ;;  %v4083_v48 = vld [vmem:[#allocation51_spill] sm:$0xff] }
 0x1b2   : > { %v1567_v40 = vpack.c.bf16 %v3744_v13, %v3744_v13  ;;  %2515 = vmatprep.subr.msk.bf16.mxu0 %vm532_vm0, %v4062_v17  ;;  %2517 = vmatprep.subr.msk.bf16.mxu1 %vm532_vm0, %v3252_v5  ;;  %v2514_v17 = vld [vmem:[%s3234_s12 + $0x10] sm:$0xff]  ;;  %s1706_s12 = sadd.s32 1, %s3225_s20 }
 0x1b3   : > { %v1717_v46 = vpack.c.bf16 %v2514_v17, %v2514_v17  ;;  %v2519_v5 = vld [vmem:[%s3239_s21 + $0x10] sm:$0xff]  ;;  %p1707_p4 = scmp.lt.s32.totalorder %s1706_s12, 8 }
 0x1b4   : > { %1601 = vmatmul.mubr.bf16.vlgmr.msra.gmra.mrb[12].mxu0 %v1567_v40  ;;  %1642 = vmatmul.mubr.bf16.vlgmr.msra.gmra.mrb[12].mxu1 %v1567_v40 }
 0x1b5   : > { %1722 = vmatpush1.bf16.msra.mxu0 %v3271_v14  ;;  %1763 = vmatpush1.bf16.msra.mxu1 %v3274_v15  ;;  %v4064_v14 = vld [vmem:[#allocation18_spill] sm:$0xff]  ;;  %v4065_v15 = vld [vmem:[#allocation19_spill] sm:$0xff]  ;;  %s1708_s21 = scalar_select %p1707_p4, 1, 0 }
 0x1b6   : > { %1753 = vmatprep.mubr.bf16.mxu0 %v4040_v23  ;;  %1794 = vmatprep.mubr.bf16.mxu1 %v4040_v23 }
 0x1b7   : > { %2520 = vmatprep.subr.msk.bf16.mxu0 %vm532_vm0, %v3262_v11  ;;  %2522 = vmatprep.subr.msk.bf16.mxu1 %vm532_vm0, %v4063_v51  ;;  %v1805_v11 = vpack.c.bf16 %v2519_v5, %v2519_v5 }
 0x1bc   : > { %2516 = vmatmul.mubr.msk.bf16.vlgmr.msra.gmra.mrb[16].mxu0 %vm528_vm1, %v1717_v46  ;;  %2518 = vmatmul.mubr.msk.bf16.vlgmr.msra.gmra.mrb[16].mxu1 %vm528_vm1, %v1717_v46  ;;  %v4084_v46 = vld [vmem:[#allocation52_spill] sm:$0xff] }
 0x1bd   : > { %1810 = vmatpush1.bf16.msra.mxu0 %v3281_v18  ;;  %1851 = vmatpush1.bf16.msra.mxu1 %v3286_v19  ;;  %v4066_v18 = vld [vmem:[#allocation20_spill] sm:$0xff]  ;;  %v4067_v19 = vld [vmem:[#allocation21_spill] sm:$0xff] }
 0x1be   : > { %1841 = vmatprep.mubr.bf16.mxu0 %v4040_v23  ;;  %1882 = vmatprep.mubr.bf16.mxu1 %v4040_v23 }
 0x1bf   : > { %1892 = vmatprep.subr.bf16.mxu0 %v3291_v20  ;;  %1933 = vmatprep.subr.bf16.mxu1 %v3296_v21  ;;  %v4068_v20 = vld [vmem:[#allocation22_spill] sm:$0xff]  ;;  %v4069_v21 = vld [vmem:[#allocation23_spill] sm:$0xff] }
 0x1c4   : > { %2521 = vmatmul.mubr.msk.bf16.vlgmr.msra.gmra.mrb[20].mxu0 %vm528_vm1, %v1805_v11  ;;  %2523 = vmatmul.mubr.msk.bf16.vlgmr.msra.gmra.mrb[20].mxu1 %vm528_vm1, %v1805_v11 }
 0x1c5   : > { %1893 = vmatpush1.bf16.msra.mxu0 %v3310_v24  ;;  %1934 = vmatpush1.bf16.msra.mxu1 %v3315_v25  ;;  %v4070_v24 = vld [vmem:[#allocation24_spill] sm:$0xff]  ;;  %v4071_v25 = vld [vmem:[#allocation25_spill] sm:$0xff] }
 0x1c6   : > { %1894 = vmatprep.subr.bf16.mxu0 %v3320_v26  ;;  %1935 = vmatprep.subr.bf16.mxu1 %v3325_v27  ;;  %v4072_v26 = vld [vmem:[#allocation26_spill] sm:$0xff]  ;;  %v4073_v27 = vld [vmem:[#allocation27_spill] sm:$0xff] }
 0x1c7   : > { %1924 = vmatprep.mubr.bf16.mxu0 %v4040_v23  ;;  %1965 = vmatprep.mubr.bf16.mxu1 %v4040_v23 }
 0x1c9   : > { %1895 = vmatpush1.bf16.msra.mxu0 %v3334_v28  ;;  %1936 = vmatpush1.bf16.msra.mxu1 %v3339_v29  ;;  %v4074_v28 = vld [vmem:[#allocation28_spill] sm:$0xff]  ;;  %v4075_v29 = vld [vmem:[#allocation29_spill] sm:$0xff] }
 0x1ca   : > { %1896 = vmatprep.subr.bf16.mxu0 %v3346_v30  ;;  %1937 = vmatprep.subr.bf16.mxu1 %v3351_v31  ;;  %v4076_v30 = vld [vmem:[#allocation30_spill] sm:$0xff]  ;;  %v4077_v31 = vld [vmem:[#allocation31_spill] sm:$0xff] }
 0x1cd   : > { %1897 = vmatpush1.bf16.msra.mxu0 %v3360_v32  ;;  %1938 = vmatpush1.bf16.msra.mxu1 %v3365_v33  ;;  %v4078_v32 = vld [vmem:[#allocation32_spill] sm:$0xff]  ;;  %v4079_v33 = vld [vmem:[#allocation33_spill] sm:$0xff] }
 0x1ce   : > { %1898 = vmatprep.subr.bf16.mxu0 %v3372_v34  ;;  %1939 = vmatprep.subr.bf16.mxu1 %v3377_v35  ;;  %v4080_v34 = vld [vmem:[#allocation34_spill] sm:$0xff]  ;;  %v4081_v35 = vld [vmem:[#allocation35_spill] sm:$0xff] }
 0x1d1   : > { %1899 = vmatpush1.bf16.msra.mxu0 %v3382_v36  ;;  %1940 = vmatpush1.bf16.msra.mxu1 %v4064_v14  ;;  %v4082_v36 = vld [vmem:[#allocation36_spill] sm:$0xff] }
 0x1d2   : > { %1900 = vmatprep.subr.bf16.mxu0 %v4065_v15  ;;  %1941 = vmatprep.subr.bf16.mxu1 %v4066_v18 }
 0x1d5   : > { %1901 = vmatpush1.bf16.msra.mxu0 %v4067_v19  ;;  %1942 = vmatpush1.bf16.msra.mxu1 %v4068_v20 }
 0x1d6   : > { %1902 = vmatprep.subr.bf16.mxu0 %v4069_v21  ;;  %1943 = vmatprep.subr.bf16.mxu1 %v4070_v24  ;;  %v4085_v21 = vld [vmem:[#allocation53_spill] sm:$0xff] }
 0x1d9   : > { %1903 = vmatpush1.bf16.msra.mxu0 %v4071_v25  ;;  %1944 = vmatpush1.bf16.msra.mxu1 %v4072_v26  ;;  %v4086_v26 = vld [vmem:[#allocation54_spill] sm:$0xff] }
 0x1da   : > { %1904 = vmatprep.subr.bf16.mxu0 %v4073_v27  ;;  %1945 = vmatprep.subr.bf16.mxu1 %v4074_v28 }
 0x1dd   : > { %1905 = vmatpush1.bf16.msra.mxu0 %v4075_v29  ;;  %1946 = vmatpush1.bf16.msra.mxu1 %v4076_v30 }
 0x1de   : > { %1906 = vmatprep.subr.bf16.mxu0 %v4077_v31  ;;  %1947 = vmatprep.subr.bf16.mxu1 %v4078_v32 }
 0x1e1   : > { %1907 = vmatpush1.bf16.msra.mxu0 %v4079_v33  ;;  %1948 = vmatpush1.bf16.msra.mxu1 %v4080_v34 }
 0x1e2   : > { %1975 = vmatprep.subr.bf16.mxu0 %v4081_v35  ;;  %2016 = vmatprep.subr.bf16.mxu1 %v4082_v36  ;;  %v3811_v35 = vstv %s1708_s21 }
 0x1e3   : > { %vm1710_vm3 = vcmp.eq.s32.totalorder %v3811_v35, 1 }
 0x267   : > { %v1519_v49 = vpop.f32.mrb[8].mxu0  ;;  %v1560_v43 = vpop.f32.mrb[8].mxu1 }
 0x268   : > { %v2582_v40 = vadd.f32 %v1519_v49, %v4083_v48  ;;  %v1521_v51 = vpop.f32.mrb[9].mxu0  ;;  %v1562_v17 = vpop.f32.mrb[9].mxu1  ;;  %v2584_v27 = vadd.f32 %v1560_v43, %v4086_v26 }
 0x269   : > { %v2583_v5 = vadd.f32 %v1521_v51, %v4084_v46  ;;  %v1523_v11 = vpop.f32.mrb[10].mxu0  ;;  %v1564_v14 = vpop.f32.mrb[10].mxu1  ;;  %v2585_v24 = vadd.f32 %v1562_v17, %v4085_v21 }
 0x26a   : > { %v2508_v15 = vmul.f32 -1.442695, %v2582_v40  ;;  %v1524_v18 = vpop.f32.mrb[11].mxu0  ;;  %v1565_v19 = vpop.f32.mrb[11].mxu1  ;;  %v4087_v11 = vld [vmem:[#allocation55_spill] sm:$0xff] }
 0x26b   : > { %v2509_v20 = vmul.f32 -1.442695, %v2583_v5  ;;  %v2510_v25 = vmul.f32 -1.442695, %v2585_v24  ;;  %v4088_v19 = vld [vmem:[#allocation56_spill] sm:$0xff] }
 0x26c   : > { %2834 = vpow2.f32 %v2508_v15 }
 0x26d   : > { %2836 = vpow2.f32 %v2509_v20 }
 0x26e   : > { %2838 = vpow2.f32 %v2510_v25 }
 0x26f   : > { %2840 = vtanh.f32 %v2584_v27 }
 0x276   : > { %v2835_v28 = vpop.eup %2834 }
 0x277   : > { %v2837_v29 = vpop.eup %2836  ;;  %v1657_v30 = vadd.f32 1.0, %v2835_v28 }
 0x278   : > { %v1663_v31 = vadd.f32 1.0, %v2837_v29  ;;  %v2839_v32 = vpop.eup %2838 }
 0x279   : > { %2842 = vrcp.f32 %v1657_v30  ;;  %v2841_v33 = vpop.eup %2840  ;;  %v1670_v40 = vadd.f32 1.0, %v2839_v32 }
 0x27a   : > { %2844 = vrcp.f32 %v1663_v31 }
 0x27b   : > { %2846 = vrcp.f32 %v1670_v40 }
 0x283   : > { %v2843_v34 = vpop.eup %2842 }
 0x284   : > { %v2845_v36 = vpop.eup %2844  ;;  %v1674_v49 = vmul.f32 %v2843_v34, %v2841_v33 }
 0x285   : > { %v1673_v43 = vmul.f32 %v2845_v36, %v3690_v50  ;;  %v2847_v33 = vpop.eup %2846 }
 0x287   : > { %v1675_v51 = vadd.f32 %v1674_v49, %v1673_v43  ;;  %v1602_v17 = vpop.f32.mrb[12].mxu0  ;;  %v1643_v5 = vpop.f32.mrb[12].mxu1 }
 0x288   : > { %v2586_v14 = vadd.f32 %v1602_v17, %v4087_v11  ;;  %v1604_v15 = vpop.f32.mrb[13].mxu0  ;;  %v1645_v18 = vpop.f32.mrb[13].mxu1  ;;  %v2588_v49 = vadd.f32 %v1643_v5, %v3695_v45 }
 0x289   : > { %2848 = vtanh.f32 %v1675_v51  ;;  %v2587_v20 = vadd.f32 %v1604_v15, %v4088_v19  ;;  %v1606_v24 = vpop.f32.mrb[14].mxu0  ;;  %v1647_v25 = vpop.f32.mrb[14].mxu1  ;;  %v3820_v27 = vsel %vm1710_vm3, %v1675_v51, %v3690_v50  ;;  %v2589_v32 = vadd.f32 %v1645_v18, %v3692_v38 }
 0x28a   : > { %v2511_v28 = vmul.f32 -1.442695, %v2586_v14  ;;  %v1607_v29 = vpop.f32.mrb[15].mxu0  ;;  %v1648_v30 = vpop.f32.mrb[15].mxu1  ;;  %v2116_v18 = vstv %s2115_s24 }
 0x28b   : > { %v2512_v31 = vmul.f32 -1.442695, %v2587_v20  ;;  %v2513_v36 = vmul.f32 -1.442695, %v2589_v32  ;;  %vm2117_vm4 = vcmp.eq.s32.totalorder %v2116_v18, 1 }
 0x28c   : > { %2850 = vpow2.f32 %v2511_v28  ;;  %v2531_v18 = vld [vmem:[%s3938_s9] ss:$0 sm:$0xff] (!%p2530_p13) }
 0x28d   : > { %2852 = vpow2.f32 %v2512_v31 }
 0x28e   : > { %2854 = vpow2.f32 %v2513_v36 }
 0x28f   : > { %2856 = vtanh.f32 %v2588_v49 }
 0x293   : > { %v2849_v34 = vpop.eup %2848 }
 0x294   : > { %v1677_v40 = vmul.f32 %v2849_v34, %v2847_v33 }
 0x296   : > { %v2851_v43 = vpop.eup %2850  ;;  %v3827_v50 = vsel %vm1710_vm3, %v1677_v40, %v3701_v4 }
 0x297   : > { %v2853_v51 = vpop.eup %2852  ;;  %v1685_v17 = vadd.f32 1.0, %v2851_v43  ;;  %v1891_v14 = vpack.c.bf16 %v3827_v50, %v3827_v50 }
 0x298   : > { %v1691_v15 = vadd.f32 1.0, %v2853_v51  ;;  %v2855_v4 = vpop.eup %2854 }
 0x299   : > { %2858 = vrcp.f32 %v1685_v17  ;;  %1925 = vmatmul.mubr.bf16.vlgmr.msra.gmra.mrb[16].mxu0 %v1891_v14  ;;  %1966 = vmatmul.mubr.bf16.vlgmr.msra.gmra.mrb[16].mxu1 %v1891_v14 }
 0x29a   : > { %2860 = vrcp.f32 %v1691_v15  ;;  %1976 = vmatpush1.bf16.msra.mxu0 %v3499_v58  ;;  %2017 = vmatpush1.bf16.msra.mxu1 %v3501_v59  ;;  %v2857_v58 = vpop.eup %2856 }
 0x29b   : > { %1977 = vmatprep.subr.bf16.mxu0 %v3505_v60  ;;  %2018 = vmatprep.subr.bf16.mxu1 %v3507_v61 }
 0x29c   : > { %2007 = vmatprep.mubr.bf16.mxu0 %v4040_v23  ;;  %2048 = vmatprep.mubr.bf16.mxu1 %v4040_v23 }
 0x29e   : > { %1978 = vmatpush1.bf16.msra.mxu0 %v3511_v62  ;;  %2019 = vmatpush1.bf16.msra.mxu1 %v3513_v63  ;;  %v1698_v62 = vadd.f32 1.0, %v2855_v4 }
 0x29f   : > { %1979 = vmatprep.subr.bf16.mxu0 %v3517_v0  ;;  %2020 = vmatprep.subr.bf16.mxu1 %v3519_v1 }
 0x2a0   : > { %2862 = vrcp.f32 %v1698_v62 }
 0x2a2   : > { %1980 = vmatpush1.bf16.msra.mxu0 %v3525_v2  ;;  %2021 = vmatpush1.bf16.msra.mxu1 %v3527_v3  ;;  %v4089_v3 = vld [vmem:[#allocation48_spill] sm:$0xff] }
 0x2a3   : > { %v2859_v59 = vpop.eup %2858  ;;  %1981 = vmatprep.subr.bf16.mxu0 %v3531_v6  ;;  %2022 = vmatprep.subr.bf16.mxu1 %v3533_v7 }
 0x2a4   : > { %v2861_v60 = vpop.eup %2860  ;;  %v1702_v61 = vmul.f32 %v2859_v59, %v2857_v58 }
 0x2a5   : > { %v1701_v63 = vmul.f32 %v2861_v60, %v3725_v41 }
 0x2a6   : > { %1982 = vmatpush1.bf16.msra.mxu0 %v4049_v12  ;;  %2023 = vmatpush1.bf16.msra.mxu1 %v4050_v53 }
 0x2a7   : > { %v1703_v0 = vadd.f32 %v1702_v61, %v1701_v63  ;;  %1983 = vmatprep.subr.bf16.mxu0 %v4051_v52  ;;  %2024 = vmatprep.subr.bf16.mxu1 %v4052_v9 }
 0x2a9   : > { %2864 = vtanh.f32 %v1703_v0  ;;  %v3853_v1 = vsel %vm1710_vm3, %v1703_v0, %v3725_v41 }
 0x2aa   : > { %1984 = vmatpush1.bf16.msra.mxu0 %v4053_v47  ;;  %2025 = vmatpush1.bf16.msra.mxu1 %v4054_v55  ;;  %v2863_v2 = vpop.eup %2862 }
 0x2ab   : > { %1985 = vmatprep.subr.bf16.mxu0 %v4055_v42  ;;  %2026 = vmatprep.subr.bf16.mxu1 %v4056_v37 }
 0x2ae   : > { %1986 = vmatpush1.bf16.msra.mxu0 %v4057_v39  ;;  %2027 = vmatpush1.bf16.msra.mxu1 %v4058_v54 }
 0x2af   : > { %1987 = vmatprep.subr.bf16.mxu0 %v3567_v10  ;;  %2028 = vmatprep.subr.bf16.mxu1 %v4059_v44 }
 0x2b2   : > { %1988 = vmatpush1.bf16.msra.mxu0 %v3573_v16  ;;  %2029 = vmatpush1.bf16.msra.mxu1 %v4089_v3 }
 0x2b3   : > { %v2865_v6 = vpop.eup %2864  ;;  %1989 = vmatprep.subr.bf16.mxu0 %v3579_v22  ;;  %2030 = vmatprep.subr.bf16.mxu1 %v4060_v56 }
 0x2b4   : > { %v1705_v7 = vmul.f32 %v2865_v6, %v2863_v2 }
 0x2b6   : > { %1990 = vmatpush1.bf16.msra.mxu0 %v3585_v57  ;;  %2031 = vmatpush1.bf16.msra.mxu1 %v3587_v8  ;;  %v3872_v10 = vsel %vm1710_vm3, %v1705_v7, %v3744_v13 }
 0x2b7   : > { %v1974_v16 = vpack.c.bf16 %v3872_v10, %v3872_v10 }
 0x2b9   : > { %2008 = vmatmul.mubr.bf16.vlgmr.msra.gmra.mrb[20].mxu0 %v1974_v16  ;;  %2049 = vmatmul.mubr.bf16.vlgmr.msra.gmra.mrb[20].mxu1 %v1974_v16 }
 0x36c   : > { %v1926_v23 = vpop.f32.mrb[16].mxu0  ;;  %v1967_v12 = vpop.f32.mrb[16].mxu1 }
 0x36d   : > { %v2590_v22 = vadd.f32 %v1926_v23, %v4083_v48  ;;  %v1928_v53 = vpop.f32.mrb[17].mxu0  ;;  %v1969_v52 = vpop.f32.mrb[17].mxu1  ;;  %v2592_v54 = vadd.f32 %v1967_v12, %v4086_v26 }
 0x36e   : > { %v2591_v57 = vadd.f32 %v1928_v53, %v4084_v46  ;;  %v1930_v9 = vpop.f32.mrb[18].mxu0  ;;  %v1971_v8 = vpop.f32.mrb[18].mxu1  ;;  %v2593_v37 = vadd.f32 %v1969_v52, %v4085_v21  ;;  %v2898_v53 = vld [vmem:[#allocation11 + $0x40] sm:$0xff] (!%p2530_p13)  }
 0x36f   : > { %v2524_v41 = vmul.f32 -1.442695, %v2590_v22  ;;  %v1931_v47 = vpop.f32.mrb[19].mxu0  ;;  %v1972_v55 = vpop.f32.mrb[19].mxu1  ;;  %2552 = vmatprep.subr.bf16.mxu0 (!%p2530_p13), %v2898_v53  ;;  %v2900_v9 = vld [vmem:[#allocation11 + $0x48] sm:$0xff] (!%p2530_p13)  }
 0x370   : > { %v2525_v42 = vmul.f32 -1.442695, %v2591_v57  ;;  %v2526_v39 = vmul.f32 -1.442695, %v2593_v37  ;;  %v2899_v57 = vld [vmem:[#allocation11] sm:$0xff] (!%p2530_p13)   ;;  %v2903_v47 = vld [vmem:[#allocation11 + $0x10] sm:$0xff] (!%p2530_p13)  }
 0x371   : > { %2866 = vpow2.f32 %v2524_v41  ;;  %2553 = vmatpush3.bf16.msra.mxu0 (!%p2530_p13), %v2899_v57  ;;  %v2901_v41 = vld [vmem:[#allocation11 + $0x8] sm:$0xff] (!%p2530_p13)   ;;  %v2904_v55 = vld [vmem:[#allocation11 + $0x58] sm:$0xff] (!%p2530_p13)   ;;  %v2907_v37 = vld [vmem:[#allocation11 + $0x20] sm:$0xff] (!%p2530_p13)  }
 0x372   : > { %2868 = vpow2.f32 %v2525_v42  ;;  %2554 = vmatprep.subr.bf16.mxu0 (!%p2530_p13), %v2900_v9  ;;  %v2906_v42 = vld [vmem:[#allocation11 + $0x60] sm:$0xff] (!%p2530_p13)  }
 0x373   : > { %2870 = vpow2.f32 %v2526_v39  ;;  %v2908_v39 = vld [vmem:[#allocation11 + $0x68] sm:$0xff] (!%p2530_p13)  }
 0x374   : > { %2872 = vtanh.f32 %v2592_v54  ;;  %v2909_v54 = vld [vmem:[#allocation11 + $0x28] sm:$0xff] (!%p2530_p13)  }
 0x375   : > { %2555 = vmatpush3.bf16.msra.mxu0 (!%p2530_p13), %v2901_v41 }
 0x37b   : > { %v2867_v44 = vpop.eup %2866 }
 0x37c   : > { %v2869_v56 = vpop.eup %2868  ;;  %v2064_v13 = vadd.f32 1.0, %v2867_v44  ;;  %v2910_v44 = vld [vmem:[#allocation11 + $0x70] sm:$0xff] (!%p2530_p13)  }
 0x37d   : > { %v2070_v48 = vadd.f32 1.0, %v2869_v56  ;;  %v2871_v46 = vpop.eup %2870  ;;  %v2911_v56 = vld [vmem:[#allocation11 + $0x30] sm:$0xff] (!%p2530_p13)  }
 0x37e   : > { %2874 = vrcp.f32 %v2064_v13  ;;  %v2873_v35 = vpop.eup %2872  ;;  %v2077_v24 = vadd.f32 1.0, %v2871_v46  ;;  %v2912_v13 = vld [vmem:[#allocation11 + $0x78] sm:$0xff] (!%p2530_p13)  }
 0x37f   : > { %2876 = vrcp.f32 %v2070_v48  ;;  %v2913_v46 = vld [vmem:[#allocation11 + $0x38] sm:$0xff] (!%p2530_p13)  }
 0x380   : > { %2878 = vrcp.f32 %v2077_v24 }
 0x388   : > { %v2875_v5 = vpop.eup %2874 }
 0x389   : > { %v2877_v20 = vpop.eup %2876  ;;  %v2081_v21 = vmul.f32 %v2875_v5, %v2873_v35 }
 0x38a   : > { %v2080_v26 = vmul.f32 %v2877_v20, %v3820_v27 }
 0x38c   : > { %v2082_v25 = vadd.f32 %v2081_v21, %v2080_v26  ;;  %v2009_v28 = vpop.f32.mrb[20].mxu0  ;;  %v2050_v29 = vpop.f32.mrb[20].mxu1 }
 0x38d   : > { %v2594_v30 = vadd.f32 %v2009_v28, %v4087_v11  ;;  %v2011_v31 = vpop.f32.mrb[21].mxu0  ;;  %v2052_v32 = vpop.f32.mrb[21].mxu1  ;;  %v2596_v59 = vadd.f32 %v2050_v29, %v3695_v45 }
 0x38e   : > { %2880 = vtanh.f32 %v2082_v25  ;;  %v2119_v33 = vsel %vm2117_vm4, %v2082_v25, %v3820_v27  ;;  %v2595_v34 = vadd.f32 %v2011_v31, %v4088_v19  ;;  %v2013_v36 = vpop.f32.mrb[22].mxu0  ;;  %v2054_v49 = vpop.f32.mrb[22].mxu1  ;;  %v2597_v14 = vadd.f32 %v2052_v32, %v3692_v38 }
 0x38f   : > { %2123 = vst [vmem:[#allocation3] sm:$0xff] %v2119_v33  ;;  %v2527_v40 = vmul.f32 -1.442695, %v2594_v30  ;;  %v2014_v43 = vpop.f32.mrb[23].mxu0  ;;  %v2055_v51 = vpop.f32.mrb[23].mxu1 }
 0x390   : > { %v2528_v17 = vmul.f32 -1.442695, %v2595_v34  ;;  %v2879_v11 = vpop.eup %2878  ;;  %v2529_v4 = vmul.f32 -1.442695, %v2597_v14 }
 0x391   : > { %2882 = vpow2.f32 %v2527_v40 }
 0x392   : > { %2884 = vpow2.f32 %v2528_v17 }
 0x393   : > { %2886 = vpow2.f32 %v2529_v4 }
 0x394   : > { %2888 = vtanh.f32 %v2596_v59 }
 0x398   : > { %v2881_v15 = vpop.eup %2880 }
 0x399   : > { %v2084_v58 = vmul.f32 %v2881_v15, %v2879_v11 }
 0x39b   : > { %v2883_v27 = vpop.eup %2882  ;;  %v3890_v19 = vsel %vm2117_vm4, %v2084_v58, %v3827_v50 }
 0x39c   : > { %v2885_v60 = vpop.eup %2884  ;;  %2122 = vst [vmem:[#allocation2] sm:$0xff] %v3890_v19  ;;  %v2092_v61 = vadd.f32 1.0, %v2883_v27  ;;  %v2130_v48 = vmax.f32 (!%p2530_p13), %v3890_v19, 0.0 }
 0x39d   : > { %v2098_v62 = vadd.f32 1.0, %v2885_v60  ;;  %v2887_v38 = vpop.eup %2886 }
 0x39e   : > { %2890 = vrcp.f32 %v2092_v61  ;;  %v2889_v63 = vpop.eup %2888  ;;  %v2105_v45 = vadd.f32 1.0, %v2887_v38  ;;  %v2132_v35 = vpack.c.bf16 (!%p2530_p13), %v2130_v48, %v2130_v48 }
 0x39f   : > { %2892 = vrcp.f32 %v2098_v62 }
 0x3a0   : > { %2894 = vrcp.f32 %v2105_v45 }
 0x3a8   : > { %v2891_v0 = vpop.eup %2890 }
 0x3a9   : > { %v2893_v2 = vpop.eup %2892  ;;  %v2109_v3 = vmul.f32 %v2891_v0, %v2889_v63 }
 0x3aa   : > { %v2108_v6 = vmul.f32 %v2893_v2, %v3853_v1  ;;  %v2895_v16 = vpop.eup %2894 }
 0x3ac   : > { %v2110_v7 = vadd.f32 %v2109_v3, %v2108_v6 }
 0x3ae   : > { %2896 = vtanh.f32 %v2110_v7  ;;  %v2121_v50 = vsel %vm2117_vm4, %v2110_v7, %v3853_v1  ;;  %v2902_v1 = vld [vmem:[#allocation11 + $0x50] sm:$0xff] (!%p2530_p13)  }
 0x3af   : > { %2125 = vst [vmem:[#allocation5] sm:$0xff] %v2121_v50  ;;  %2556 = vmatprep.subr.bf16.mxu0 (!%p2530_p13), %v2902_v1 }
 0x3b0   : > { %2557 = vmatpush3.bf16.msra.mxu0 (!%p2530_p13), %v2903_v47 }
 0x3b1   : > { %2558 = vmatprep.subr.bf16.mxu0 (!%p2530_p13), %v2904_v55 }
 0x3b6   : > { %2129 = sbr.rel (%p2530_p13) target bundleno = 1193 (0x4a9), region = 80 }
 0x3b8   : > { %v2897_v23 = vpop.eup %2896 }
 0x3b9   : > { %v2112_v12 = vmul.f32 %v2897_v23, %v2895_v16 }
 0x3bb   : > { %v2120_v22 = vsel %vm2117_vm4, %v2112_v12, %v3872_v10  ;;  %v2905_v10 = vld [vmem:[#allocation11 + $0x18] sm:$0xff] (!%p2530_p13)  }
 0x3bc   : > { %2124 = vst [vmem:[#allocation4] sm:$0xff] %v2120_v22  ;;  %v2131_v52 = vmax.f32 (!%p2530_p13), %v2120_v22, 0.0  ;;  %2559 = vmatpush3.bf16.msra.mxu0 (!%p2530_p13), %v2905_v10 }
 0x3bd   : > { %2560 = vmatprep.subr.bf16.mxu0 %v2906_v42 }
 0x3be   : > { %v2133_v8 = vpack.c.bf16 %v2131_v52, %v2131_v52 }
 0x3c0   : > { %2301 = vmatprep.mubr.bf16.mxu0 %v2133_v8  ;;  %2561 = vmatpush3.bf16.msra.mxu0 %v2907_v37 }
 0x3c1   : > { %2562 = vmatprep.subr.bf16.mxu0 %v2908_v39 }
 0x3c4   : > { %2563 = vmatpush3.bf16.msra.mxu0 %v2909_v54 }
 0x3c5   : > { %2564 = vmatprep.subr.bf16.mxu0 %v2910_v44 }
 0x3c8   : > { %2565 = vmatpush3.bf16.msra.mxu0 %v2911_v56 }
 0x3c9   : > { %2566 = vmatprep.subr.bf16.mxu0 %v2912_v13 }
 0x3cc   : > { %2567 = vmatpush3.bf16.msra.mxu0 %v2913_v46 }
 0x3cf   : > { %2302 = vmatmul.mubr.bf16.vlgmr.msra.gmra.mrb[0].mxu0 %v2132_v35 }
 0x4a2   : > { %v2568_v5 = vpop.f32.mrb[0].mxu0 }
 0x4a3   : > { %v2569_v20 = vpop.f32.mrb[1].mxu0 }
 0x4a4   : > { %v2570_v21 = vadd.f32 %v2569_v20, %v2568_v5  ;;  %v2571_v24 = vpop.f32.mrb[2].mxu0 }
 0x4a5   : > { %v2572_v26 = vpop.f32.mrb[3].mxu0 }
 0x4a6   : > { %v2304_v25 = vadd.f32 %v2570_v21, %v2531_v18 }
 0x4a8   : > { %2309 = vst [vmem:[#allocation12] sm:$0xff] %v2304_v25 }
 0x4a9 PF: > { %p2678_p0 = scmp.eq.s32.totalorder %s3115_s16, 2  ;;  %s3053_s26 = smov [#allocation12]  }
 0x4aa   : > { %s2317_s19 = sshll.u32 %s3053_s26, 4  ;;  %s2318_s19 = int_to_ptr.vmem [resolvable:$true] %s2317_s19 }
 0x4ab   : > { %s2998_s27 = scalar_lea.vmem %s2318_s19, 128  ;;  %p3005_p9 = scmp.lt.s32.totalorder %s2318_s19, %s2318_s19 }
 0x4ac   : > { %p2999_p1 = scmp.ne.s32.totalorder %s2318_s19, %s2998_s27  ;;  %p3006_p2 = scmp.lt.s32.totalorder %s2998_s27, %s2998_s27 }
 0x4ae   : > { %p3000_p5 = pnand %p2999_p1, %p2678_p0  ;;  %p3007_p10 = por %p3006_p2, %p3005_p9 }
 0x4b0   : > { %p3001_p7 = pneg %p3000_p5 }
 0x4b2   : > { %p3008_p11 = pnand %p3007_p10, %p3001_p7 }
 0x4b4   : > { %3011 = shalt.err (!%p3008_p11)
}
 0x4b5   : > { %s3012_s15 = scalar_lea.hbm %s3939_s10, 128 }
 0x4b6   : > { %p3013_p12 = scmp.ne.s32.totalorder %s3939_s10, %s3012_s15  ;;  %p3018_p4 = scmp.lt.u32.totalorder %s3012_s15, %s3939_s10 }
 0x4b8   : > { %p3014_p6 = pnand %p3013_p12, %p2678_p0 }
 0x4ba   : > { %p3015_p3 = pneg %p3014_p6 }
 0x4bc   : > { %p3020_p8 = pnand %p3018_p4, %p3015_p3 }
 0x4be   : > { %3023 = shalt.err (!%p3020_p8)
}
 0x4bf   : > { %2659 = dma.vmem_to_hbm [thread:$0]  (%p2678_p0), %s2318_s19, 128, %s3939_s10, [#allocation8]  }
 0x4c0   : > { %3037 = dma.done.wait (%p2678_p0), [#allocation8], 128  }
 0x4c1   : > { %3039 = vsyncadd (%p2678_p0), [#allocation8], 4294967168 }
 0x4c2 PF: > { %s23_s13 = sadd.s32 1, %s3042_s13  }
 0x4c3   : > { %p20_p13 = scmp.ge.s32.totalorder %s23_s13, 5  }
 0x4c5   :  { %22 = sbr.rel (!%p20_p13) target bundleno = 3 (0x3), region = 115 }
 0x4cc   :  { %2330 = vsyncpa [#allocation7], 1 }
 0x4cd   :  { %2332 = vsyncpa [#allocation7 + $0x1], 1 }
 0x4ce   :  { %2333 = vsyncpa [#allocation10], 1 }
 0x4cf   :  { %2334 = vsyncpa [#allocation8], 1 }
 0x4d0   :  { %2336 = vsyncpa [#allocation8 + $0x1], 1 }

</bundles_post_ra>
